<compile_context>
chip_gen: v7x
topology: tpu7x:2x2x1
jax: 0.10.0
libtpu: 0.0.40
codegen_flags: <defaults>
</compile_context>

<pallas_src>
import functools
import math

import jax
import jax.numpy as jnp
from jax import lax
from jax.experimental import pallas as pl
from jax.experimental.pallas import tpu as pltpu

_LANE = 128
_SUBLANE = 8


def _round_up(x, m):
    return ((x + m - 1) // m) * m


def _stable_softplus(x):
    # softplus(x) = max(x, 0) + log1p(exp(-|x|))  -- no f32 exp overflow.
    return jnp.maximum(x, 0.0) + jnp.log1p(jnp.exp(-jnp.abs(x)))


# ----------------------------------------------------------------------------
# Fused forward + KL kernel: whole layer stack in one kernel, activations
# stay in VMEM/registers, parameters read exactly once.
# ----------------------------------------------------------------------------
def _fnet_fwd_kernel(*refs, layer_dims, padded_dims, act, head, sigma_prior):
    """Ref layout (all VMEM, full blocks, no grid):
         refs[0]                      : x      (B_pad, in_pad_0)      f32
         refs[1 : 1+L]                : mu_l   (in_pad_l, out_pad_l)  f32
         refs[1+L : 1+2L]             : rho_l  (in_pad_l, out_pad_l)  f32
         refs[1+2L : 1+3L]            : eps_l  (in_pad_l, out_pad_l)  f32
         refs[1+3L]                   : y      (B_pad, out_pad_last)  f32
         refs[2+3L]                   : kl     (1, 1)                 f32
    """
    n_layers = len(layer_dims)
    x_ref = refs[0]
    mu_refs = refs[1:1 + n_layers]
    rho_refs = refs[1 + n_layers:1 + 2 * n_layers]
    eps_refs = refs[1 + 2 * n_layers:1 + 3 * n_layers]
    y_ref = refs[1 + 3 * n_layers]
    kl_ref = refs[2 + 3 * n_layers]

    # Hoisted scalar constants (Python-time).
    log_sp = jnp.float32(math.log(sigma_prior))
    inv_2sp2 = jnp.float32(1.0 / (2.0 * sigma_prior * sigma_prior))

    h = x_ref[...]                                  # f32 activations
    kl_acc = jnp.zeros((1, 1), jnp.float32)

    for l in range(n_layers):
        in_f, out_f = layer_dims[l]
        in_p, out_p = padded_dims[l]

        mu = mu_refs[l][...]
        sigma = _stable_softplus(rho_refs[l][...])  # computed ONCE, reused
        eps = eps_refs[l][...]                      # zero in padded region
        # Sampled weight; padded entries are exactly 0 (mu=0, eps=0 there).
        w = mu + sigma * eps

        # ---- fused analytic KL(q(w) || N(0, sigma_prior^2)) ----
        row = lax.broadcasted_iota(jnp.int32, (in_p, out_p), 0)
        col = lax.broadcasted_iota(jnp.int32, (in_p, out_p), 1)
        valid_w = (row < in_f) & (col < out_f)      # exclude padding from sum
        kl_elem = (log_sp - jnp.log(sigma)
                   + (sigma * sigma + mu * mu) * inv_2sp2 - 0.5)
        kl_acc = kl_acc + jnp.sum(jnp.where(valid_w, kl_elem, 0.0),
                                  keepdims=True)

        # ---- (M,K)@(K,N) on the MXU: bf16 operands, f32 accumulation ----
        y = jnp.dot(h.astype(jnp.bfloat16), w.astype(jnp.bfloat16),
                    preferred_element_type=jnp.float32)

        if l < n_layers - 1:
            # Padded output columns are exactly 0 (zero weights & zero padded
            # activations), so no masking is needed on hidden layers.
            if act == "relu":
                y = jnp.maximum(y, 0.0)
            elif act == "tanh":
                y = jnp.tanh(y)
            # 'linear' -> identity
            h = y
        else:
            if head == "softmax":
                ocol = lax.broadcasted_iota(jnp.int32, y.shape, 1)
                y = jnp.where(ocol < out_f, y, -1e30)   # keep pad out of denom
                m = jnp.max(y, axis=-1, keepdims=True)
                e = jnp.exp(y - m)
                y = e / jnp.sum(e, axis=-1, keepdims=True)
            elif head == "sigmoid":
                y = 1.0 / (1.0 + jnp.exp(-y))           # pad cols -> 0.5, sliced away
            # regression / 'none': raw logits (pad cols exactly 0)
            y_ref[...] = y.astype(y_ref.dtype)

    kl_ref[...] = kl_acc


def fnet_forward(x_pad, mus, rhos, epss, *, layer_dims, padded_dims, act,
                 head, sigma_prior):
    n_layers = len(layer_dims)
    b_pad = x_pad.shape[0]
    out_p_last = padded_dims[-1][1]

    kernel = functools.partial(
        _fnet_fwd_kernel, layer_dims=layer_dims, padded_dims=padded_dims,
        act=act, head=head, sigma_prior=float(sigma_prior))

    vmem_spec = pl.BlockSpec(memory_space=pltpu.MemorySpace.VMEM)
    n_in = 1 + 3 * n_layers

    # Size the scoped VMEM limit from actual residency (mu + rho + eps + io),
    # with generous headroom, clamped to what every generation can provide.
    param_bytes = sum(4 * ip * op for ip, op in padded_dims)
    io_bytes = 4 * b_pad * (padded_dims[0][0] + out_p_last)
    est = 3 * param_bytes + io_bytes
    vmem_limit = int(min(max(2 * est + (8 << 20), 32 << 20), 64 << 20))

    y, kl = pl.pallas_call(
        kernel,
        out_shape=(jax.ShapeDtypeStruct((b_pad, out_p_last), jnp.float32),
                   jax.ShapeDtypeStruct((1, 1), jnp.float32)),
        in_specs=[vmem_spec] * n_in,
        out_specs=(vmem_spec, vmem_spec),
        compiler_params=pltpu.CompilerParams(vmem_limit_bytes=vmem_limit),
    )(x_pad, *mus, *rhos, *epss)
    return y, kl


# ----------------------------------------------------------------------------
# FNetNetwork (forward-pass equivalent of the PyTorch module)
# ----------------------------------------------------------------------------
class FNetNetworkPallas:
    def __init__(self, input_size, output_size, layers, activation,
                 sigma_prior, task, key):
        if activation not in ("relu", "tanh", "linear"):
            raise NotImplementedError(
                "Other activations have not been implemented!")
        self.activation = activation
        self.task = task
        self.sigma_prior = float(sigma_prior)

        self.input_size = 1
        for i in input_size:
            self.input_size *= int(i)
        self.output_size = int(output_size)

        dims = [self.input_size] + [int(l) for l in layers] + [self.output_size]
        self.layer_dims = tuple((dims[i], dims[i + 1])
                                for i in range(len(dims) - 1))
        # Per-layer padding: each layer padded to its own lane-dense shape.
        self.padded_dims = tuple((_round_up(i, _LANE), _round_up(o, _LANE))
                                 for i, o in self.layer_dims)

        self.mus, self.rhos = [], []
        for (in_f, out_f), (in_p, out_p) in zip(self.layer_dims,
                                                self.padded_dims):
            key, k_mu = jax.random.split(key)
            bound = 1.0 / math.sqrt(in_f)
            mu = jax.random.uniform(k_mu, (in_f, out_f), jnp.float32,
                                    minval=-bound, maxval=bound)
            mu_p = jnp.zeros((in_p, out_p), jnp.float32)
            mu_p = mu_p.at[:in_f, :out_f].set(mu)
            # Valid region rho=-5 (standard BBB init); padded region very
            # negative so softplus ~ 0 there (inert even without eps padding).
            rho_p = jnp.full((in_p, out_p), -12.0, jnp.float32)
            rho_p = rho_p.at[:in_f, :out_f].set(-5.0)
            self.mus.append(mu_p)
            self.rhos.append(rho_p)

        if task == "binary_classification":
            self.head = "sigmoid"
        elif task == "classification":
            self.head = "softmax"
        else:
            self.head = "none"

    def __call__(self, x, key):
        x = x.reshape(-1, self.input_size).astype(jnp.float32)
        b = x.shape[0]
        b_pad = _round_up(max(b, 1), _SUBLANE)
        in_p0 = self.padded_dims[0][0]
        x_pad = jnp.pad(x, ((0, b_pad - b), (0, in_p0 - self.input_size)))

        # Host-drawn weight-space noise (matches torch.randn semantics of the
        # reference), zero-padded so sampled padded weights are exactly zero.
        epss = []
        for (in_f, out_f), (in_p, out_p) in zip(self.layer_dims,
                                                self.padded_dims):
            key, k_eps = jax.random.split(key)
            eps = jax.random.normal(k_eps, (in_f, out_f), jnp.float32)
            epss.append(jnp.pad(eps, ((0, in_p - in_f), (0, out_p - out_f))))

        y_pad, kl = fnet_forward(
            x_pad, self.mus, self.rhos, epss,
            layer_dims=self.layer_dims, padded_dims=self.padded_dims,
            act=self.activation, head=self.head, sigma_prior=self.sigma_prior)
        return y_pad[:b, :self.output_size], kl.reshape(1)


# ----------------------------------------------------------------------------
# Demo
# ----------------------------------------------------------------------------
if __name__ == "__main__":
    key = jax.random.PRNGKey(0)
    k_param, k_input, k_fwd = jax.random.split(key, 3)

    # input_size = (4, 16) -> 64 flat features, two hidden layers of 32,
    # 8-way classification head, batch of 2.
    input_size = (4, 16)
    output_size = 8
    hidden_layers = [32, 32]

    net = FNetNetworkPallas(
        input_size=input_size,
        output_size=output_size,
        layers=hidden_layers,
        activation="relu",
        sigma_prior=0.1,
        task="classification",
        key=k_param,
    )

    x = jax.random.normal(k_input, (2,) + input_size, jnp.float32)
    probs, kl = net(x, k_fwd)
    jax.block_until_ready((probs, kl))

    assert probs.shape == (2, output_size)
    assert kl.shape == (1,)
    assert bool(jnp.all(jnp.isfinite(probs)))
    assert bool(jnp.all(jnp.isfinite(kl)))
    # Softmax rows should sum to ~1.
    assert bool(jnp.all(jnp.abs(jnp.sum(probs, axis=-1) - 1.0) < 1e-4))
    # Closed-form Gaussian KL is strictly positive here.
    assert bool(kl[0] > 0.0)

    print("KERNEL_OK")
</pallas_src>

<mosaic_0001>
module attributes {stable_mosaic.version = 11 : i64} {
  func.func @_fnet_fwd_kernel(%arg0: memref<8x128xf32, #tpu.memory_space<vmem>>, %arg1: memref<128x128xf32, #tpu.memory_space<vmem>>, %arg2: memref<128x128xf32, #tpu.memory_space<vmem>>, %arg3: memref<128x128xf32, #tpu.memory_space<vmem>>, %arg4: memref<128x128xf32, #tpu.memory_space<vmem>>, %arg5: memref<128x128xf32, #tpu.memory_space<vmem>>, %arg6: memref<128x128xf32, #tpu.memory_space<vmem>>, %arg7: memref<128x128xf32, #tpu.memory_space<vmem>>, %arg8: memref<128x128xf32, #tpu.memory_space<vmem>>, %arg9: memref<128x128xf32, #tpu.memory_space<vmem>>, %arg10: memref<8x128xf32, #tpu.memory_space<vmem>>, %arg11: memref<1x1xf32, #tpu.memory_space<vmem>>) attributes {dimension_semantics = [], scalar_prefetch = 0 : i64, scratch_operands = 0 : i64, tpu.core_type = #tpu.core_type<tc>} {
    %c0 = arith.constant 0 : index
    %c0_0 = arith.constant 0 : index
    %0 = vector.load %arg0[%c0, %c0_0] : memref<8x128xf32, #tpu.memory_space<vmem>>, vector<8x128xf32>
    %cst = arith.constant 0.000000e+00 : f32
    %1 = vector.broadcast %cst : f32 to vector<1x1xf32>
    %c0_1 = arith.constant 0 : index
    %c0_2 = arith.constant 0 : index
    %2 = vector.load %arg1[%c0_1, %c0_2] : memref<128x128xf32, #tpu.memory_space<vmem>>, vector<128x128xf32>
    %c0_3 = arith.constant 0 : index
    %c0_4 = arith.constant 0 : index
    %3 = vector.load %arg4[%c0_3, %c0_4] : memref<128x128xf32, #tpu.memory_space<vmem>>, vector<128x128xf32>
    %cst_5 = arith.constant 0.000000e+00 : f32
    %4 = vector.broadcast %cst_5 : f32 to vector<128x128xf32>
    %5 = arith.maximumf %3, %4 : vector<128x128xf32>
    %6 = math.absf %3 : vector<128x128xf32>
    %cst_6 = arith.constant 0.000000e+00 : f32
    %7 = vector.broadcast %cst_6 : f32 to vector<128x128xf32>
    %8 = arith.subf %7, %6 : vector<128x128xf32>
    %9 = math.exp %8 : vector<128x128xf32>
    %10 = math.log1p %9 : vector<128x128xf32>
    %11 = arith.addf %5, %10 : vector<128x128xf32>
    %c0_7 = arith.constant 0 : index
    %c0_8 = arith.constant 0 : index
    %12 = vector.load %arg7[%c0_7, %c0_8] : memref<128x128xf32, #tpu.memory_space<vmem>>, vector<128x128xf32>
    %13 = arith.mulf %11, %12 : vector<128x128xf32>
    %14 = arith.addf %2, %13 : vector<128x128xf32>
    %15 = tpu.iota {dimensions = array<i32: 0>} : vector<128x128xi32>
    %16 = tpu.iota {dimensions = array<i32: 1>} : vector<128x128xi32>
    %c64_i32 = arith.constant 64 : i32
    %17 = vector.broadcast %c64_i32 : i32 to vector<128x128xi32>
    %18 = arith.cmpi slt, %15, %17 : vector<128x128xi32>
    %c32_i32 = arith.constant 32 : i32
    %19 = vector.broadcast %c32_i32 : i32 to vector<128x128xi32>
    %20 = arith.cmpi slt, %16, %19 : vector<128x128xi32>
    %21 = arith.andi %18, %20 : vector<128x128xi1>
    %22 = math.log %11 : vector<128x128xf32>
    %cst_9 = arith.constant -2.30258512 : f32
    %23 = vector.broadcast %cst_9 : f32 to vector<128x128xf32>
    %24 = arith.subf %23, %22 : vector<128x128xf32>
    %25 = arith.mulf %11, %11 : vector<128x128xf32>
    %26 = arith.mulf %2, %2 : vector<128x128xf32>
    %27 = arith.addf %25, %26 : vector<128x128xf32>
    %cst_10 = arith.constant 5.000000e+01 : f32
    %28 = vector.broadcast %cst_10 : f32 to vector<128x128xf32>
    %29 = arith.mulf %27, %28 : vector<128x128xf32>
    %30 = arith.addf %24, %29 : vector<128x128xf32>
    %cst_11 = arith.constant 5.000000e-01 : f32
    %31 = vector.broadcast %cst_11 : f32 to vector<128x128xf32>
    %32 = arith.subf %30, %31 : vector<128x128xf32>
    %cst_12 = arith.constant 0.000000e+00 : f32
    %33 = vector.broadcast %cst_12 : f32 to vector<128x128xf32>
    %34 = arith.select %21, %32, %33 : vector<128x128xi1>, vector<128x128xf32>
    %35 = vector.shape_cast %34 : vector<128x128xf32> to vector<1x128x128xf32>
    %cst_13 = arith.constant dense<0.000000e+00> : vector<1xf32>
    %36 = vector.multi_reduction <add>, %35, %cst_13 [1, 2] : vector<1x128x128xf32> to vector<1xf32>
    %37 = vector.shape_cast %36 : vector<1xf32> to vector<1x1x1xf32>
    %38 = vector.extract %37[0, 0, 0] : f32 from vector<1x1x1xf32>
    %39 = vector.broadcast %38 : f32 to vector<1x1xf32>
    %40 = arith.addf %1, %39 : vector<1x1xf32>
    %41 = arith.truncf %0 : vector<8x128xf32> to vector<8x128xbf16>
    %42 = arith.truncf %14 : vector<128x128xf32> to vector<128x128xbf16>
    %cst_14 = arith.constant dense<0.000000e+00> : vector<8x128xf32>
    %43 = tpu.matmul %41, %42, %cst_14 {dimension_numbers = #tpu.dot_dimension_numbers<[1], [0], [0], [1], [0, 0, 1, 1], [], []>} : vector<8x128xbf16>, vector<128x128xbf16>, vector<8x128xf32> -> vector<8x128xf32>
    %cst_15 = arith.constant 0.000000e+00 : f32
    %44 = vector.broadcast %cst_15 : f32 to vector<8x128xf32>
    %45 = arith.maximumf %43, %44 : vector<8x128xf32>
    %c0_16 = arith.constant 0 : index
    %c0_17 = arith.constant 0 : index
    %46 = vector.load %arg2[%c0_16, %c0_17] : memref<128x128xf32, #tpu.memory_space<vmem>>, vector<128x128xf32>
    %c0_18 = arith.constant 0 : index
    %c0_19 = arith.constant 0 : index
    %47 = vector.load %arg5[%c0_18, %c0_19] : memref<128x128xf32, #tpu.memory_space<vmem>>, vector<128x128xf32>
    %cst_20 = arith.constant 0.000000e+00 : f32
    %48 = vector.broadcast %cst_20 : f32 to vector<128x128xf32>
    %49 = arith.maximumf %47, %48 : vector<128x128xf32>
    %50 = math.absf %47 : vector<128x128xf32>
    %cst_21 = arith.constant 0.000000e+00 : f32
    %51 = vector.broadcast %cst_21 : f32 to vector<128x128xf32>
    %52 = arith.subf %51, %50 : vector<128x128xf32>
    %53 = math.exp %52 : vector<128x128xf32>
    %54 = math.log1p %53 : vector<128x128xf32>
    %55 = arith.addf %49, %54 : vector<128x128xf32>
    %c0_22 = arith.constant 0 : index
    %c0_23 = arith.constant 0 : index
    %56 = vector.load %arg8[%c0_22, %c0_23] : memref<128x128xf32, #tpu.memory_space<vmem>>, vector<128x128xf32>
    %57 = arith.mulf %55, %56 : vector<128x128xf32>
    %58 = arith.addf %46, %57 : vector<128x128xf32>
    %59 = tpu.iota {dimensions = array<i32: 0>} : vector<128x128xi32>
    %60 = tpu.iota {dimensions = array<i32: 1>} : vector<128x128xi32>
    %c32_i32_24 = arith.constant 32 : i32
    %61 = vector.broadcast %c32_i32_24 : i32 to vector<128x128xi32>
    %62 = arith.cmpi slt, %59, %61 : vector<128x128xi32>
    %c32_i32_25 = arith.constant 32 : i32
    %63 = vector.broadcast %c32_i32_25 : i32 to vector<128x128xi32>
    %64 = arith.cmpi slt, %60, %63 : vector<128x128xi32>
    %65 = arith.andi %62, %64 : vector<128x128xi1>
    %66 = math.log %55 : vector<128x128xf32>
    %cst_26 = arith.constant -2.30258512 : f32
    %67 = vector.broadcast %cst_26 : f32 to vector<128x128xf32>
    %68 = arith.subf %67, %66 : vector<128x128xf32>
    %69 = arith.mulf %55, %55 : vector<128x128xf32>
    %70 = arith.mulf %46, %46 : vector<128x128xf32>
    %71 = arith.addf %69, %70 : vector<128x128xf32>
    %cst_27 = arith.constant 5.000000e+01 : f32
    %72 = vector.broadcast %cst_27 : f32 to vector<128x128xf32>
    %73 = arith.mulf %71, %72 : vector<128x128xf32>
    %74 = arith.addf %68, %73 : vector<128x128xf32>
    %cst_28 = arith.constant 5.000000e-01 : f32
    %75 = vector.broadcast %cst_28 : f32 to vector<128x128xf32>
    %76 = arith.subf %74, %75 : vector<128x128xf32>
    %cst_29 = arith.constant 0.000000e+00 : f32
    %77 = vector.broadcast %cst_29 : f32 to vector<128x128xf32>
    %78 = arith.select %65, %76, %77 : vector<128x128xi1>, vector<128x128xf32>
    %79 = vector.shape_cast %78 : vector<128x128xf32> to vector<1x128x128xf32>
    %cst_30 = arith.constant dense<0.000000e+00> : vector<1xf32>
    %80 = vector.multi_reduction <add>, %79, %cst_30 [1, 2] : vector<1x128x128xf32> to vector<1xf32>
    %81 = vector.shape_cast %80 : vector<1xf32> to vector<1x1x1xf32>
    %82 = vector.extract %81[0, 0, 0] : f32 from vector<1x1x1xf32>
    %83 = vector.broadcast %82 : f32 to vector<1x1xf32>
    %84 = arith.addf %40, %83 : vector<1x1xf32>
    %85 = arith.truncf %45 : vector<8x128xf32> to vector<8x128xbf16>
    %86 = arith.truncf %58 : vector<128x128xf32> to vector<128x128xbf16>
    %cst_31 = arith.constant dense<0.000000e+00> : vector<8x128xf32>
    %87 = tpu.matmul %85, %86, %cst_31 {dimension_numbers = #tpu.dot_dimension_numbers<[1], [0], [0], [1], [0, 0, 1, 1], [], []>} : vector<8x128xbf16>, vector<128x128xbf16>, vector<8x128xf32> -> vector<8x128xf32>
    %cst_32 = arith.constant 0.000000e+00 : f32
    %88 = vector.broadcast %cst_32 : f32 to vector<8x128xf32>
    %89 = arith.maximumf %87, %88 : vector<8x128xf32>
    %c0_33 = arith.constant 0 : index
    %c0_34 = arith.constant 0 : index
    %90 = vector.load %arg3[%c0_33, %c0_34] : memref<128x128xf32, #tpu.memory_space<vmem>>, vector<128x128xf32>
    %c0_35 = arith.constant 0 : index
    %c0_36 = arith.constant 0 : index
    %91 = vector.load %arg6[%c0_35, %c0_36] : memref<128x128xf32, #tpu.memory_space<vmem>>, vector<128x128xf32>
    %cst_37 = arith.constant 0.000000e+00 : f32
    %92 = vector.broadcast %cst_37 : f32 to vector<128x128xf32>
    %93 = arith.maximumf %91, %92 : vector<128x128xf32>
    %94 = math.absf %91 : vector<128x128xf32>
    %cst_38 = arith.constant 0.000000e+00 : f32
    %95 = vector.broadcast %cst_38 : f32 to vector<128x128xf32>
    %96 = arith.subf %95, %94 : vector<128x128xf32>
    %97 = math.exp %96 : vector<128x128xf32>
    %98 = math.log1p %97 : vector<128x128xf32>
    %99 = arith.addf %93, %98 : vector<128x128xf32>
    %c0_39 = arith.constant 0 : index
    %c0_40 = arith.constant 0 : index
    %100 = vector.load %arg9[%c0_39, %c0_40] : memref<128x128xf32, #tpu.memory_space<vmem>>, vector<128x128xf32>
    %101 = arith.mulf %99, %100 : vector<128x128xf32>
    %102 = arith.addf %90, %101 : vector<128x128xf32>
    %103 = tpu.iota {dimensions = array<i32: 0>} : vector<128x128xi32>
    %104 = tpu.iota {dimensions = array<i32: 1>} : vector<128x128xi32>
    %c32_i32_41 = arith.constant 32 : i32
    %105 = vector.broadcast %c32_i32_41 : i32 to vector<128x128xi32>
    %106 = arith.cmpi slt, %103, %105 : vector<128x128xi32>
    %c8_i32 = arith.constant 8 : i32
    %107 = vector.broadcast %c8_i32 : i32 to vector<128x128xi32>
    %108 = arith.cmpi slt, %104, %107 : vector<128x128xi32>
    %109 = arith.andi %106, %108 : vector<128x128xi1>
    %110 = math.log %99 : vector<128x128xf32>
    %cst_42 = arith.constant -2.30258512 : f32
    %111 = vector.broadcast %cst_42 : f32 to vector<128x128xf32>
    %112 = arith.subf %111, %110 : vector<128x128xf32>
    %113 = arith.mulf %99, %99 : vector<128x128xf32>
    %114 = arith.mulf %90, %90 : vector<128x128xf32>
    %115 = arith.addf %113, %114 : vector<128x128xf32>
    %cst_43 = arith.constant 5.000000e+01 : f32
    %116 = vector.broadcast %cst_43 : f32 to vector<128x128xf32>
    %117 = arith.mulf %115, %116 : vector<128x128xf32>
    %118 = arith.addf %112, %117 : vector<128x128xf32>
    %cst_44 = arith.constant 5.000000e-01 : f32
    %119 = vector.broadcast %cst_44 : f32 to vector<128x128xf32>
    %120 = arith.subf %118, %119 : vector<128x128xf32>
    %cst_45 = arith.constant 0.000000e+00 : f32
    %121 = vector.broadcast %cst_45 : f32 to vector<128x128xf32>
    %122 = arith.select %109, %120, %121 : vector<128x128xi1>, vector<128x128xf32>
    %123 = vector.shape_cast %122 : vector<128x128xf32> to vector<1x128x128xf32>
    %cst_46 = arith.constant dense<0.000000e+00> : vector<1xf32>
    %124 = vector.multi_reduction <add>, %123, %cst_46 [1, 2] : vector<1x128x128xf32> to vector<1xf32>
    %125 = vector.shape_cast %124 : vector<1xf32> to vector<1x1x1xf32>
    %126 = vector.extract %125[0, 0, 0] : f32 from vector<1x1x1xf32>
    %127 = vector.broadcast %126 : f32 to vector<1x1xf32>
    %128 = arith.addf %84, %127 : vector<1x1xf32>
    %129 = arith.truncf %89 : vector<8x128xf32> to vector<8x128xbf16>
    %130 = arith.truncf %102 : vector<128x128xf32> to vector<128x128xbf16>
    %cst_47 = arith.constant dense<0.000000e+00> : vector<8x128xf32>
    %131 = tpu.matmul %129, %130, %cst_47 {dimension_numbers = #tpu.dot_dimension_numbers<[1], [0], [0], [1], [0, 0, 1, 1], [], []>} : vector<8x128xbf16>, vector<128x128xbf16>, vector<8x128xf32> -> vector<8x128xf32>
    %132 = tpu.iota {dimensions = array<i32: 1>} : vector<8x128xi32>
    %c8_i32_48 = arith.constant 8 : i32
    %133 = vector.broadcast %c8_i32_48 : i32 to vector<8x128xi32>
    %134 = arith.cmpi slt, %132, %133 : vector<8x128xi32>
    %cst_49 = arith.constant -1.000000e+30 : f32
    %135 = vector.broadcast %cst_49 : f32 to vector<8x128xf32>
    %136 = arith.select %134, %131, %135 : vector<8x128xi1>, vector<8x128xf32>
    %cst_50 = arith.constant dense<0xFF800000> : vector<8xf32>
    %137 = vector.multi_reduction <maximumf>, %136, %cst_50 [1] : vector<8x128xf32> to vector<8xf32>
    %138 = vector.shape_cast %137 : vector<8xf32> to vector<8x1xf32>
    %139 = vector.broadcast %138 : vector<8x1xf32> to vector<8x128xf32>
    %140 = arith.subf %136, %139 : vector<8x128xf32>
    %141 = math.exp %140 : vector<8x128xf32>
    %cst_51 = arith.constant dense<0.000000e+00> : vector<8xf32>
    %142 = vector.multi_reduction <add>, %141, %cst_51 [1] : vector<8x128xf32> to vector<8xf32>
    %143 = vector.shape_cast %142 : vector<8xf32> to vector<8x1xf32>
    %144 = vector.broadcast %143 : vector<8x1xf32> to vector<8x128xf32>
    %145 = arith.divf %141, %144 : vector<8x128xf32>
    %c0_52 = arith.constant 0 : index
    %c0_53 = arith.constant 0 : index
    %146 = vector.load %arg10[%c0_52, %c0_53] : memref<8x128xf32, #tpu.memory_space<vmem>>, vector<8x128xf32>
    tpu.vector_store %arg10[%c0_52, %c0_53], %145 {strides = array<i32>} : memref<8x128xf32, #tpu.memory_space<vmem>>, vector<8x128xf32>,
    %c0_54 = arith.constant 0 : index
    %c0_55 = arith.constant 0 : index
    %147 = vector.load %arg11[%c0_54, %c0_55] : memref<1x1xf32, #tpu.memory_space<vmem>>, vector<1x1xf32>
    tpu.vector_store %arg11[%c0_54, %c0_55], %128 {strides = array<i32>} : memref<1x1xf32, #tpu.memory_space<vmem>>, vector<1x1xf32>,
    return
  }
}

</mosaic_0001>

<bundles_post_ra>
// kernel: tpu_custom_call.1
= control target key start
LH: loop header
LB: loop body
LE: loop exit
PB: predicated region body
PF: predicated region fallthrough
CT: control target
= control target key end

     0   :  { %17 = vsyncpa [#allocation3], 0  ;;  %s3678_s0 = inlined_call_operand.hbm [shape: f32[8,128], index: 0, kind: input, shape index: {}]   ;;  %s3679_s1 = inlined_call_operand.hbm [shape: f32[128,128], index: 1, kind: input, shape index: {}]   ;;  %s3680_s2 = inlined_call_operand.hbm [shape: f32[128,128], index: 2, kind: input, shape index: {}]   ;;  %s3681_s3 = inlined_call_operand.hbm [shape: f32[128,128], index: 3, kind: input, shape index: {}]   ;;  %s3682_s4 = inlined_call_operand.hbm [shape: f32[128,128], index: 4, kind: input, shape index: {}]   ;;  %s3683_s5 = inlined_call_operand.hbm [shape: f32[128,128], index: 5, kind: input, shape index: {}]   ;;  %s3684_s6 = inlined_call_operand.hbm [shape: f32[128,128], index: 6, kind: input, shape index: {}]   ;;  %s3685_s7 = inlined_call_operand.hbm [shape: f32[128,128], index: 7, kind: input, shape index: {}]   ;;  %s3686_s8 = inlined_call_operand.hbm [shape: f32[128,128], index: 8, kind: input, shape index: {}]   ;;  %s3687_s9 = inlined_call_operand.hbm [shape: f32[128,128], index: 9, kind: input, shape index: {}]   ;;  %s3688_s10 = inlined_call_operand.hbm [shape: f32[8,128], index: 10, kind: output, shape index: {0}]   ;;  %s3689_s11 = inlined_call_operand.hbm [shape: f32[1,1], index: 11, kind: output, shape index: {1}]  }
   0x1   :  { %18 = vsyncpa [#allocation6], 0 }
   0x2   :  { %19 = vsyncpa [#allocation9], 0 }
   0x3   :  { %20 = vsyncpa [#allocation12], 0 }
   0x4   :  { %21 = vsyncpa [#allocation15], 0 }
   0x5   :  { %22 = vsyncpa [#allocation18], 0 }
   0x6   :  { %23 = vsyncpa [#allocation4], 0 }
   0x7   :  { %24 = vsyncpa [#allocation21], 0  ;;  %s2663_s17 = smov [#allocation5]   ;;  %s2383_s21 = scalar_lea.hbm %s3679_s1, 2048 }
   0x8   :  { %s40_s18 = sshll.u32 %s2663_s17, 4  ;;  %p2384_p0 = scmp.ne.s32.totalorder %s3679_s1, %s2383_s21  ;;  %s41_s18 = int_to_ptr.vmem [resolvable:$true] %s40_s18 }
   0x9   :  { %p2387_p1 = scmp.lt.u32.totalorder %s2383_s21, %s3679_s1 }
   0xb   :  { %p2389_p2 = pnand %p2387_p1, %p2384_p0 }
   0xd   :  { %2392 = shalt.err (!%p2389_p2)
}
   0xe   :  { %s2393_s26 = scalar_lea.vmem %s41_s18, 2048  ;;  %p2398_p4 = scmp.lt.s32.totalorder %s41_s18, %s41_s18 }
   0xf   :  { %p2394_p3 = scmp.ne.s32.totalorder %s41_s18, %s2393_s26  ;;  %p2399_p5 = scmp.lt.s32.totalorder %s2393_s26, %s2393_s26 }
  0x11   :  { %p2400_p6 = por %p2399_p5, %p2398_p4 }
  0x13   :  { %p2401_p7 = pnand %p2400_p6, %p2394_p3 }
  0x15   :  { %2404 = shalt.err (!%p2401_p7)
}
  0x16   :  { %s2664_s27 = smov 128   ;;  %s2665_s28 = smov 8  }
  0x17   :  { %46 = dma.hbm_to_vmem [thread:$0]  %s3679_s1, 2048, %s41_s18, [#allocation6], %s2664_s27, %s2664_s27, %s2665_s28  }
  0x18   :  { %s2666_s12 = smov [#allocation8]   ;;  %s2667_s14 = smov [#allocation11]  }
  0x19   :  { %s64_s13 = sshll.u32 %s2666_s12, 4  ;;  %s88_s15 = sshll.u32 %s2667_s14, 4  ;;  %s65_s13 = int_to_ptr.vmem [resolvable:$true] %s64_s13  ;;  %s89_s15 = int_to_ptr.vmem [resolvable:$true] %s88_s15 }
  0x1a   :  { %s2405_s19 = scalar_lea.hbm %s3681_s3, 2048 }
  0x1b   :  { %p2406_p8 = scmp.ne.s32.totalorder %s3681_s3, %s2405_s19  ;;  %p2409_p9 = scmp.lt.u32.totalorder %s2405_s19, %s3681_s3 }
  0x1d   :  { %p2411_p10 = pnand %p2409_p9, %p2406_p8 }
  0x1f   :  { %2414 = shalt.err (!%p2411_p10)
}
  0x20   :  { %s2415_s1 = scalar_lea.vmem %s65_s13, 2048  ;;  %p2420_p12 = scmp.lt.s32.totalorder %s65_s13, %s65_s13 }
  0x21   :  { %p2416_p11 = scmp.ne.s32.totalorder %s65_s13, %s2415_s1  ;;  %p2421_p13 = scmp.lt.s32.totalorder %s2415_s1, %s2415_s1 }
  0x23   :  { %p2422_p0 = por %p2421_p13, %p2420_p12 }
  0x25   :  { %p2423_p1 = pnand %p2422_p0, %p2416_p11 }
  0x27   :  { %2426 = shalt.err (!%p2423_p1)
}
  0x28   :  { %70 = dma.hbm_to_vmem [thread:$0]  %s3681_s3, 2048, %s65_s13, [#allocation9], %s2664_s27, %s2664_s27, %s2665_s28  }
  0x29   :  { %s2427_s29 = scalar_lea.hbm %s3683_s5, 2048 }
  0x2a   :  { %p2428_p2 = scmp.ne.s32.totalorder %s3683_s5, %s2427_s29  ;;  %p2431_p3 = scmp.lt.u32.totalorder %s2427_s29, %s3683_s5 }
  0x2c   :  { %p2433_p4 = pnand %p2431_p3, %p2428_p2 }
  0x2e   :  { %2436 = shalt.err (!%p2433_p4)
}
  0x2f   :  { %s2437_s17 = scalar_lea.vmem %s89_s15, 2048  ;;  %p2442_p6 = scmp.lt.s32.totalorder %s89_s15, %s89_s15 }
  0x30   :  { %p2438_p5 = scmp.ne.s32.totalorder %s89_s15, %s2437_s17  ;;  %p2443_p7 = scmp.lt.s32.totalorder %s2437_s17, %s2437_s17 }
  0x32   :  { %p2444_p8 = por %p2443_p7, %p2442_p6 }
  0x34   :  { %p2445_p9 = pnand %p2444_p8, %p2438_p5 }
  0x36   :  { %2448 = shalt.err (!%p2445_p9)
}
  0x37   :  { %94 = dma.hbm_to_vmem [thread:$0]  %s3683_s5, 2048, %s89_s15, [#allocation12], %s2664_s27, %s2664_s27, %s2665_s28  }
  0x38   :  { %s2668_s19 = smov [#allocation14]   ;;  %s2669_s21 = smov [#allocation2]  }
  0x39   :  { %s112_s20 = sshll.u32 %s2668_s19, 4  ;;  %s31_s22 = sshll.u32 %s2669_s21, 4  ;;  %s113_s20 = int_to_ptr.vmem [resolvable:$true] %s112_s20  ;;  %s32_s22 = int_to_ptr.vmem [resolvable:$true] %s31_s22 }
  0x3a   :  { %s2449_s18 = scalar_lea.hbm %s3685_s7, 2048 }
  0x3b   :  { %p2450_p10 = scmp.ne.s32.totalorder %s3685_s7, %s2449_s18  ;;  %p2453_p11 = scmp.lt.u32.totalorder %s2449_s18, %s3685_s7 }
  0x3d   :  { %p2455_p12 = pnand %p2453_p11, %p2450_p10 }
  0x3f   :  { %2458 = shalt.err (!%p2455_p12)
}
  0x40   :  { %s2459_s5 = scalar_lea.vmem %s113_s20, 2048  ;;  %p2464_p0 = scmp.lt.s32.totalorder %s113_s20, %s113_s20 }
  0x41   :  { %p2460_p13 = scmp.ne.s32.totalorder %s113_s20, %s2459_s5  ;;  %p2465_p1 = scmp.lt.s32.totalorder %s2459_s5, %s2459_s5 }
  0x43   :  { %p2466_p2 = por %p2465_p1, %p2464_p0 }
  0x45   :  { %p2467_p3 = pnand %p2466_p2, %p2460_p13 }
  0x47   :  { %2470 = shalt.err (!%p2467_p3)
}
  0x48   :  { %118 = dma.hbm_to_vmem [thread:$0]  %s3685_s7, 2048, %s113_s20, [#allocation15], %s2664_s27, %s2664_s27, %s2665_s28  }
  0x49   :  { %s2471_s16 = scalar_lea.hbm %s3678_s0, 128 }
  0x4a   :  { %p2472_p4 = scmp.ne.s32.totalorder %s3678_s0, %s2471_s16  ;;  %p2475_p5 = scmp.lt.u32.totalorder %s2471_s16, %s3678_s0 }
  0x4c   :  { %p2477_p6 = pnand %p2475_p5, %p2472_p4 }
  0x4e   :  { %2480 = shalt.err (!%p2477_p6)
}
  0x4f   :  { %s2481_s21 = scalar_lea.vmem %s32_s22, 128  ;;  %p2486_p8 = scmp.lt.s32.totalorder %s32_s22, %s32_s22 }
  0x50   :  { %p2482_p7 = scmp.ne.s32.totalorder %s32_s22, %s2481_s21  ;;  %p2487_p9 = scmp.lt.s32.totalorder %s2481_s21, %s2481_s21 }
  0x52   :  { %p2488_p10 = por %p2487_p9, %p2486_p8 }
  0x54   :  { %p2489_p11 = pnand %p2488_p10, %p2482_p7 }
  0x56   :  { %2492 = shalt.err (!%p2489_p11)
}
  0x57   :  { %34 = dma.hbm_to_vmem [thread:$0]  %s3678_s0, 128, %s32_s22, [#allocation3]  }
  0x58   :  { %s2670_s23 = smov [#allocation7]   ;;  %s2671_s18 = smov [#allocation10]  }
  0x59   :  { %s52_s1 = sshll.u32 %s2670_s23, 4  ;;  %s76_s24 = sshll.u32 %s2671_s18, 4  ;;  %s53_s1 = int_to_ptr.vmem [resolvable:$true] %s52_s1  ;;  %s77_s24 = int_to_ptr.vmem [resolvable:$true] %s76_s24 }
  0x5a   :  { %s2493_s29 = scalar_lea.hbm %s3680_s2, 2048 }
  0x5b   :  { %p2494_p12 = scmp.ne.s32.totalorder %s3680_s2, %s2493_s29  ;;  %p2497_p13 = scmp.lt.u32.totalorder %s2493_s29, %s3680_s2 }
  0x5d   :  { %p2499_p0 = pnand %p2497_p13, %p2494_p12 }
  0x5f   :  { %2502 = shalt.err (!%p2499_p0)
}
  0x60   :  { %s2503_s0 = scalar_lea.vmem %s53_s1, 2048  ;;  %p2508_p2 = scmp.lt.s32.totalorder %s53_s1, %s53_s1 }
  0x61   :  { %p2504_p1 = scmp.ne.s32.totalorder %s53_s1, %s2503_s0  ;;  %p2509_p3 = scmp.lt.s32.totalorder %s2503_s0, %s2503_s0 }
  0x63   :  { %p2510_p4 = por %p2509_p3, %p2508_p2 }
  0x65   :  { %p2511_p5 = pnand %p2510_p4, %p2504_p1 }
  0x67   :  { %2514 = shalt.err (!%p2511_p5)
}
  0x68   :  { %58 = dma.hbm_to_vmem [thread:$0]  %s3680_s2, 2048, %s53_s1, [#allocation6], %s2664_s27, %s2664_s27, %s2665_s28  }
  0x69   :  { %s2515_s3 = scalar_lea.hbm %s3682_s4, 2048 }
  0x6a   :  { %p2516_p6 = scmp.ne.s32.totalorder %s3682_s4, %s2515_s3  ;;  %p2519_p7 = scmp.lt.u32.totalorder %s2515_s3, %s3682_s4 }
  0x6c   :  { %p2521_p8 = pnand %p2519_p7, %p2516_p6 }
  0x6e   :  { %2524 = shalt.err (!%p2521_p8)
}
  0x6f   :  { %s2525_s20 = scalar_lea.vmem %s77_s24, 2048  ;;  %p2530_p10 = scmp.lt.s32.totalorder %s77_s24, %s77_s24 }
  0x70   :  { %p2526_p9 = scmp.ne.s32.totalorder %s77_s24, %s2525_s20  ;;  %p2531_p11 = scmp.lt.s32.totalorder %s2525_s20, %s2525_s20 }
  0x72   :  { %p2532_p12 = por %p2531_p11, %p2530_p10 }
  0x74   :  { %p2533_p13 = pnand %p2532_p12, %p2526_p9 }
  0x76   :  { %2536 = shalt.err (!%p2533_p13)
}
  0x77   :  { %82 = dma.hbm_to_vmem [thread:$0]  %s3682_s4, 2048, %s77_s24, [#allocation9], %s2664_s27, %s2664_s27, %s2665_s28  }
  0x78   :  { %s2672_s1 = smov [#allocation13]   ;;  %s2673_s25 = smov [#allocation16]  }
  0x79   :  { %s100_s18 = sshll.u32 %s2672_s1, 4  ;;  %s124_s26 = sshll.u32 %s2673_s25, 4  ;;  %s101_s18 = int_to_ptr.vmem [resolvable:$true] %s100_s18  ;;  %s125_s26 = int_to_ptr.vmem [resolvable:$true] %s124_s26 }
  0x7a   :  { %s2537_s15 = scalar_lea.hbm %s3684_s6, 2048 }
  0x7b   :  { %p2538_p0 = scmp.ne.s32.totalorder %s3684_s6, %s2537_s15  ;;  %p2541_p1 = scmp.lt.u32.totalorder %s2537_s15, %s3684_s6 }
  0x7d   :  { %p2543_p2 = pnand %p2541_p1, %p2538_p0 }
  0x7f   :  { %2546 = shalt.err (!%p2543_p2)
}
  0x80   :  { %s2547_s4 = scalar_lea.vmem %s101_s18, 2048  ;;  %p2552_p4 = scmp.lt.s32.totalorder %s101_s18, %s101_s18 }
  0x81   :  { %p2548_p3 = scmp.ne.s32.totalorder %s101_s18, %s2547_s4  ;;  %p2553_p5 = scmp.lt.s32.totalorder %s2547_s4, %s2547_s4 }
  0x83   :  { %p2554_p6 = por %p2553_p5, %p2552_p4 }
  0x85   :  { %p2555_p7 = pnand %p2554_p6, %p2548_p3 }
  0x87   :  { %2558 = shalt.err (!%p2555_p7)
}
  0x88   :  { %106 = dma.hbm_to_vmem [thread:$0]  %s3684_s6, 2048, %s101_s18, [#allocation12], %s2664_s27, %s2664_s27, %s2665_s28  }
  0x89   :  { %s2559_s3 = scalar_lea.hbm %s3686_s8, 2048 }
  0x8a   :  { %p2560_p8 = scmp.ne.s32.totalorder %s3686_s8, %s2559_s3  ;;  %p2563_p9 = scmp.lt.u32.totalorder %s2559_s3, %s3686_s8 }
  0x8c   :  { %p2565_p10 = pnand %p2563_p9, %p2560_p8 }
  0x8e   :  { %2568 = shalt.err (!%p2565_p10)
}
  0x8f   :  { %s2569_s20 = scalar_lea.vmem %s125_s26, 2048  ;;  %p2574_p12 = scmp.lt.s32.totalorder %s125_s26, %s125_s26 }
  0x90   :  { %p2570_p11 = scmp.ne.s32.totalorder %s125_s26, %s2569_s20  ;;  %p2575_p13 = scmp.lt.s32.totalorder %s2569_s20, %s2569_s20 }
  0x92   :  { %p2576_p0 = por %p2575_p13, %p2574_p12 }
  0x94   :  { %p2577_p1 = pnand %p2576_p0, %p2570_p11 }
  0x96   :  { %2580 = shalt.err (!%p2577_p1)
}
  0x97   :  { %130 = dma.hbm_to_vmem [thread:$0]  %s3686_s8, 2048, %s125_s26, [#allocation15], %s2664_s27, %s2664_s27, %s2665_s28  }
  0x98   :  { %s2674_s23 = smov [#allocation17]   ;;  %s2581_s29 = scalar_lea.hbm %s3687_s9, 2048 }
  0x99   :  { %s136_s1 = sshll.u32 %s2674_s23, 4  ;;  %p2582_p2 = scmp.ne.s32.totalorder %s3687_s9, %s2581_s29  ;;  %s137_s1 = int_to_ptr.vmem [resolvable:$true] %s136_s1 }
  0x9a   :  { %p2585_p3 = scmp.lt.u32.totalorder %s2581_s29, %s3687_s9 }
  0x9c   :  { %p2587_p4 = pnand %p2585_p3, %p2582_p2 }
  0x9e   :  { %2590 = shalt.err (!%p2587_p4)
}
  0x9f   :  { %s2591_s0 = scalar_lea.vmem %s137_s1, 2048  ;;  %p2596_p6 = scmp.lt.s32.totalorder %s137_s1, %s137_s1 }
  0xa0   :  { %p2592_p5 = scmp.ne.s32.totalorder %s137_s1, %s2591_s0  ;;  %p2597_p7 = scmp.lt.s32.totalorder %s2591_s0, %s2591_s0 }
  0xa2   :  { %p2598_p8 = por %p2597_p7, %p2596_p6 }
  0xa4   :  { %p2599_p9 = pnand %p2598_p8, %p2592_p5 }
  0xa6   :  { %2602 = shalt.err (!%p2599_p9)
}
  0xa7   :  { %142 = dma.hbm_to_vmem [thread:$0]  %s3687_s9, 2048, %s137_s1, [#allocation18], %s2664_s27, %s2664_s27, %s2665_s28  }
  0xa8   :  { %2647 = dma.done.wait [#allocation3], 128  }
  0xa9   :  { %2648 = vsyncadd [#allocation3], 4294967168 }
  0xaa   :  { %2649 = dma.done.wait [#allocation6], 4096  }
  0xab   :  { %2650 = vsyncadd [#allocation6], 4294963200 }
  0xac   :  { %2651 = dma.done.wait [#allocation9], 4096  }
  0xad   :  { %2652 = vsyncadd [#allocation9], 4294963200 }
  0xae   :  { %2653 = dma.done.wait [#allocation12], 4096  }
  0xaf   :  { %2654 = vsyncadd [#allocation12], 4294963200 }
  0xb0   :  { %2655 = dma.done.wait [#allocation15], 4096  }
  0xb1   :  { %2656 = vsyncadd [#allocation15], 4294963200 }
  0xb2   :  { %2657 = dma.done.wait [#allocation18], 2048  }
  0xb3   :  { %2658 = vsyncadd [#allocation18], 4294965248  ;;  %v3690_v0 = vmov 0.0   ;;  %vm2676_vm0 = vmmov 0   ;;  %v2892_v1 = vld [vmem:[#allocation10] sm:$0xff]  ;;  %v2894_v2 = vld [vmem:[#allocation10 + $0x8] sm:$0xff] }
  0xb4   :  { %2065 = vmatprep.subr.bf16.mxu0 %v3690_v0  ;;  %2081 = vmatprep.mubr.msk.bf16.mxu0 %vm2676_vm0, %v3690_v0  ;;  %v223_v3 = vand.u32 2147483647, %v2892_v1  ;;  %v224_v4 = vand.u32 2147483647, %v2894_v2  ;;  %v2898_v5 = vld [vmem:[#allocation10 + $0x10] sm:$0xff]  ;;  %v2900_v7 = vld [vmem:[#allocation10 + $0x18] sm:$0xff] }
  0xb5   :  { %2085 = vmatprep.subr.bf16.mxu1 %v3690_v0  ;;  %2101 = vmatprep.mubr.msk.bf16.mxu1 %vm2676_vm0, %v3690_v0  ;;  %v225_v8 = vand.u32 2147483647, %v2898_v5  ;;  %v226_v10 = vand.u32 2147483647, %v2900_v7  ;;  %v2904_v13 = vld [vmem:[#allocation10 + $0x20] sm:$0xff]  ;;  %v2906_v14 = vld [vmem:[#allocation10 + $0x28] sm:$0xff] }
  0xb6   :  { %v239_v6 = vsub.f32 0.0, %v223_v3  ;;  %v240_v9 = vsub.f32 0.0, %v224_v4  ;;  %v227_v18 = vand.u32 2147483647, %v2904_v13  ;;  %v228_v19 = vand.u32 2147483647, %v2906_v14 }
  0xb7   :  { %v241_v12 = vsub.f32 0.0, %v225_v8  ;;  %v242_v16 = vsub.f32 0.0, %v226_v10  ;;  %v2910_v23 = vld [vmem:[#allocation10 + $0x30] sm:$0xff]  ;;  %v2912_v24 = vld [vmem:[#allocation10 + $0x38] sm:$0xff]  ;;  %v2916_v30 = vld [vmem:[#allocation10 + $0x40] sm:$0xff]  ;;  %v207_v35 = vmax.f32 %v2892_v1, 0.0 }
  0xb8   :  { %v255_v11 = vmul.f32 1.442695, %v239_v6  ;;  %v257_v15 = vmul.f32 1.442695, %v240_v9  ;;  %v243_v21 = vsub.f32 0.0, %v227_v18  ;;  %v244_v22 = vsub.f32 0.0, %v228_v19 }
  0xb9   :  { %v259_v17 = vmul.f32 1.442695, %v241_v12  ;;  %v261_v20 = vmul.f32 1.442695, %v242_v16  ;;  %v229_v25 = vand.u32 2147483647, %v2910_v23 }
  0xba   :  { %2147 = vpow2.f32 %v255_v11  ;;  %v263_v26 = vmul.f32 1.442695, %v243_v21  ;;  %v265_v27 = vmul.f32 1.442695, %v244_v22  ;;  %v230_v28 = vand.u32 2147483647, %v2912_v24 }
  0xbb   :  { %2149 = vpow2.f32 %v257_v15  ;;  %v245_v29 = vsub.f32 0.0, %v229_v25  ;;  %v2918_v31 = vld [vmem:[#allocation10 + $0x48] sm:$0xff]  ;;  %v2920_v32 = vld [vmem:[#allocation5] sm:$0xff]  ;;  %v2929_v37 = vld [vmem:[#allocation5 + $0x10] sm:$0xff]  ;;  %v231_v41 = vand.u32 2147483647, %v2916_v30 }
  0xbc   :  { %2151 = vpow2.f32 %v259_v17  ;;  %v246_v33 = vsub.f32 0.0, %v230_v28  ;;  %v2922_v34 = vld [vmem:[#allocation5 + $0x8] sm:$0xff]  ;;  %v2927_v36 = vmul.f32 %v2920_v32, %v2920_v32  ;;  %v232_v42 = vand.u32 2147483647, %v2918_v31  ;;  %v2938_v44 = vld [vmem:[#allocation5 + $0x18] sm:$0xff]  ;;  %v2953_v61 = vld [vmem:[#allocation10 + $0x50] sm:$0xff] }
  0xbd   :  { %2153 = vpow2.f32 %v261_v20  ;;  %v267_v38 = vmul.f32 1.442695, %v245_v29  ;;  %v2933_v39 = vmul.f32 %v2922_v34, %v2922_v34  ;;  %v208_v43 = vmax.f32 %v2894_v2, 0.0  ;;  %s2677_s22 = smov [#allocation20]  }
  0xbe   :  { %2155 = vpow2.f32 %v263_v26  ;;  %v269_v40 = vmul.f32 1.442695, %v246_v33  ;;  %v209_v45 = vmax.f32 %v2898_v5, 0.0  ;;  %v2943_v46 = vmul.f32 %v2929_v37, %v2929_v37  ;;  %s1972_s4 = sshll.u32 %s2677_s22, 4  ;;  %s1973_s4 = int_to_ptr.vmem [resolvable:$true] %s1972_s4 }
  0xbf   :  { %2157 = vpow2.f32 %v265_v27  ;;  %v210_v48 = vmax.f32 %v2900_v7, 0.0  ;;  %v2948_v49 = vmul.f32 %v2938_v44, %v2938_v44  ;;  %v211_v50 = vmax.f32 %v2904_v13, 0.0  ;;  %s2603_s24 = scalar_lea.vmem %s1973_s4, 16  ;;  %s2607_s14 = scalar_lea.vmem %s1973_s4, 32 }
  0xc0   :  { %2159 = vpow2.f32 %v267_v38  ;;  %v212_v54 = vmax.f32 %v2906_v14, 0.0  ;;  %v247_v59 = vsub.f32 0.0, %v231_v41  ;;  %v248_v60 = vsub.f32 0.0, %v232_v42  ;;  %p2604_p10 = scmp.ne.s32.totalorder %s1973_s4, %s2603_s24  ;;  %p2608_p11 = scmp.lt.s32.totalorder %s1973_s4, %s1973_s4 }
  0xc1   :  { %2161 = vpow2.f32 %v269_v40  ;;  %v233_v12 = vand.u32 2147483647, %v2953_v61  ;;  %v3709_v13 = vmax.f32 %v2912_v24, 0.0  ;;  %p2609_p12 = scmp.lt.s32.totalorder %s2607_s14, %s2603_s24 }
  0xc2   :  { %v271_v18 = vmul.f32 1.442695, %v247_v59  ;;  %v2957_v19 = vmul.f32 1.442695, %v248_v60 }
  0xc3   :  { %p2610_p13 = por %p2609_p12, %p2608_p11 }
  0xc4   :  { %v2148_v47 = vpop.eup %2147 }
  0xc5   :  { %v2150_v51 = vpop.eup %2149  ;;  %v287_v52 = vadd.f32 1.0, %v2148_v47  ;;  %v290_v53 = vmul.f32 -0.5, %v2148_v47  ;;  %v293_v63 = vand.u32 2147483647, %v2148_v47  ;;  %p2611_p0 = pnand %p2610_p13, %p2604_p10 }
  0xc6   :  { %v2152_v56 = vpop.eup %2151  ;;  %v296_v57 = vadd.f32 1.0, %v2150_v51  ;;  %v299_v58 = vmul.f32 -0.5, %v2150_v51  ;;  %v302_v3 = vand.u32 2147483647, %v2150_v51 }
  0xc7   :  { %v2154_v62 = vpop.eup %2153  ;;  %2163 = vlog2.f32 %v287_v52  ;;  %v305_v4 = vadd.f32 1.0, %v2152_v56  ;;  %v291_v6 = vadd.f32 1.0, %v290_v53  ;;  %v308_v9 = vmul.f32 -0.5, %v2152_v56 }
  0xc8   :  { %2165 = vlog2.f32 %v296_v57  ;;  %v300_v8 = vadd.f32 1.0, %v299_v58  ;;  %v311_v10 = vand.u32 2147483647, %v2152_v56  ;;  %v314_v11 = vadd.f32 1.0, %v2154_v62  ;;  %v2156_v15 = vpop.eup %2155 }
  0xc9   :  { %2167 = vlog2.f32 %v305_v4  ;;  %v317_v16 = vmul.f32 -0.5, %v2154_v62  ;;  %v2158_v20 = vpop.eup %2157  ;;  %vm2959_vm1 = vcmp.lt.f32.partialorder %v293_v63, 0.0004427343  ;;  %v323_v22 = vadd.f32 1.0, %v2156_v15 }
  0xca   :  { %2169 = vlog2.f32 %v314_v11  ;;  %v326_v25 = vmul.f32 -0.5, %v2156_v15  ;;  %v292_v26 = vmul.f32 %v2148_v47, %v291_v6  ;;  %v301_v27 = vmul.f32 %v2150_v51, %v300_v8  ;;  %v2160_v33 = vpop.eup %2159 }
  0xcb   :  { %vm2963_vm2 = vcmp.lt.f32.partialorder %v302_v3, 0.0004427343  ;;  %v309_v29 = vadd.f32 1.0, %v308_v9  ;;  %vm2967_vm3 = vcmp.lt.f32.partialorder %v311_v10, 0.0004427343  ;;  %v332_v41 = vadd.f32 1.0, %v2158_v20  ;;  %v2971_v52 = vpop.eup %2161 }
  0xcc   :  { %v320_v40 = vand.u32 2147483647, %v2154_v62  ;;  %v335_v42 = vmul.f32 -0.5, %v2158_v20  ;;  %v318_v53 = vadd.f32 1.0, %v317_v16  ;;  %2171 = vlog2.f32 %v323_v22 }
  0xcd   :  { %v329_v57 = vand.u32 2147483647, %v2156_v15  ;;  %v341_v47 = vadd.f32 1.0, %v2160_v33  ;;  %v327_v51 = vadd.f32 1.0, %v326_v25  ;;  %2173 = vlog2.f32 %v332_v41 }
  0xce   :  { %v336_v58 = vadd.f32 1.0, %v335_v42  ;;  %v344_v59 = vmul.f32 -0.5, %v2160_v33  ;;  %v338_v60 = vand.u32 2147483647, %v2158_v20  ;;  %v347_v63 = vand.u32 2147483647, %v2160_v33 }
  0xcf   :  { %2175 = vlog2.f32 %v341_v47  ;;  %v350_v3 = vadd.f32 1.0, %v2971_v52  ;;  %v310_v6 = vmul.f32 %v2152_v56, %v309_v29  ;;  %v353_v9 = vmul.f32 -0.5, %v2971_v52  ;;  %v447_v29 = vld [vmem:[#allocation14] sm:$0xff] }
  0xd0   :  { %v345_v8 = vadd.f32 1.0, %v344_v59  ;;  %v356_v10 = vand.u32 2147483647, %v2971_v52  ;;  %vm2976_vm4 = vcmp.lt.f32.partialorder %v320_v40, 0.0004427343  ;;  %v249_v25 = vsub.f32 0.0, %v233_v12 }
  0xd1   :  { %v2164_v4 = vpop.eup %2163  ;;  %2177 = vlog2.f32 %v350_v3  ;;  %v319_v47 = vmul.f32 %v2154_v62, %v318_v53  ;;  %v2980_v17 = vmul.f32 %v2156_v15, %v327_v51  ;;  %v2982_v55 = vmul.f32 %v2158_v20, %v336_v58  ;;  %v448_v53 = vld [vmem:[#allocation14 + $0x8] sm:$0xff]  ;;  %v454_v40 = vld [vmem:[#allocation14 + $0x38] sm:$0xff] }
  0xd2   :  { %v2166_v11 = vpop.eup %2165  ;;  %v289_v16 = vmul.f32 0.6931472, %v2164_v4  ;;  %vm2986_vm5 = vcmp.lt.f32.partialorder %v329_v57, 0.0004427343  ;;  %vm2990_vm6 = vcmp.lt.f32.partialorder %v338_v60, 0.0004427343  ;;  %v2994_v12 = vmul.f32 %v2160_v33, %v345_v8 }
  0xd3   :  { %v2168_v41 = vpop.eup %2167  ;;  %v298_v42 = vmul.f32 0.6931472, %v2166_v11  ;;  %vm2996_vm7 = vcmp.lt.f32.partialorder %v347_v63, 0.0004427343  ;;  %v354_v15 = vadd.f32 1.0, %v353_v9  ;;  %2179 = vpow2.f32 %v271_v18  ;;  %v449_v60 = vld [vmem:[#allocation14 + $0x10] sm:$0xff] }
  0xd4   :  { %v295_v56 = vsel %vm2959_vm1, %v292_v26, %v289_v16  ;;  %v307_v59 = vmul.f32 0.6931472, %v2168_v41  ;;  %v2170_v20 = vpop.eup %2169  ;;  %vm3004_vm8 = vcmp.lt.f32.partialorder %v356_v10, 0.0004427343  ;;  %v275_v63 = vmul.f32 1.442695, %v249_v25 }
  0xd5   :  { %v304_v21 = vsel %vm2963_vm2, %v301_v27, %v298_v42  ;;  %v431_v26 = vadd.f32 %v295_v56, %v207_v35  ;;  %v316_v58 = vmul.f32 0.6931472, %v2170_v20  ;;  %v355_v41 = vmul.f32 %v2971_v52, %v354_v15  ;;  %v452_v15 = vld [vmem:[#allocation14 + $0x28] sm:$0xff]  ;;  %v453_v4 = vld [vmem:[#allocation14 + $0x30] sm:$0xff] }
  0xd6   :  { %v432_v33 = vadd.f32 %v304_v21, %v208_v43  ;;  %v313_v51 = vsel %vm2967_vm3, %v310_v6, %v307_v59  ;;  %v2172_v35 = vpop.eup %2171  ;;  %v450_v43 = vld [vmem:[#allocation14 + $0x18] sm:$0xff] }
  0xd7   :  { %v463_v28 = vmul.f32 %v447_v29, %v431_v26  ;;  %2181 = vlog2.f32 %v431_v26  ;;  %v595_v27 = vmul.f32 %v431_v26, %v431_v26  ;;  %v433_v1 = vadd.f32 %v313_v51, %v209_v45  ;;  %v2174_v18 = vpop.eup %2173  ;;  %v179_v26 = vld [vmem:[#allocation5 + $0x20] sm:$0xff] }
  0xd8   :  { %v464_v3 = vmul.f32 %v448_v53, %v432_v33  ;;  %2183 = vlog2.f32 %v432_v33  ;;  %v596_v8 = vmul.f32 %v432_v33, %v432_v33  ;;  %v322_v2 = vsel %vm2976_vm4, %v319_v47, %v316_v58  ;;  %v180_v53 = vld [vmem:[#allocation5 + $0x28] sm:$0xff] }
  0xd9   :  { %v479_v38 = vadd.f32 %v463_v28, %v2920_v32  ;;  %v627_v6 = vadd.f32 %v2927_v36, %v595_v27  ;;  %v434_v9 = vadd.f32 %v322_v2, %v210_v48  ;;  %v465_v10 = vmul.f32 %v449_v60, %v433_v1  ;;  %v2176_v11 = vpop.eup %2175  ;;  %v181_v60 = vld [vmem:[#allocation5 + $0x30] sm:$0xff] }
  0xda   :  { %v480_v5 = vadd.f32 %v464_v3, %v2922_v34  ;;  %v628_v45 = vadd.f32 %v2933_v39, %v596_v8  ;;  %2185 = vlog2.f32 %v433_v1  ;;  %v597_v16 = vmul.f32 %v433_v1, %v433_v1  ;;  %v182_v8 = vld [vmem:[#allocation5 + $0x38] sm:$0xff] }
  0xdb   :  { %v466_v25 = vmul.f32 %v450_v43, %v434_v9  ;;  %v481_v22 = vadd.f32 %v465_v10, %v2929_v37  ;;  %2187 = vlog2.f32 %v434_v9  ;;  %v2178_v32 = vpop.eup %2177  ;;  %v598_v36 = vmul.f32 %v434_v9, %v434_v9  ;;  %v3028_v37 = vld [vmem:[#allocation10 + $0x58] sm:$0xff] }
  0xdc   :  { %v734_v42 = vpack.c.bf16 %v480_v5, %v479_v38  ;;  %v629_v7 = vadd.f32 %v2943_v46, %v597_v16  ;;  %2189 = vpow2.f32 %v2957_v19  ;;  %v325_v34 = vmul.f32 0.6931472, %v2172_v35  ;;  %v451_v19 = vld [vmem:[#allocation14 + $0x20] sm:$0xff] }
  0xdd   :  { %v482_v48 = vadd.f32 %v466_v25, %v2938_v44  ;;  %v334_v47 = vmul.f32 0.6931472, %v2174_v18  ;;  %v343_v39 = vmul.f32 0.6931472, %v2176_v11  ;;  %v630_v56 = vadd.f32 %v2948_v49, %v598_v36  ;;  %v3030_v52 = vpop.eup %2179 }
  0xde   :  { %2066 = vmatpush3.bf16.msra.mxu0 %v734_v42  ;;  %v352_v29 = vmul.f32 0.6931472, %v2178_v32  ;;  %2191 = vpow2.f32 %v275_v63  ;;  %v331_v46 = vsel %vm2986_vm5, %v2980_v17, %v325_v34  ;;  %v3708_v33 = vmax.f32 %v2910_v23, 0.0 }
  0xdf   :  { %2067 = vmatprep.subr.bf16.mxu0 %v3690_v0  ;;  %v735_v59 = vpack.c.bf16 %v482_v48, %v481_v22  ;;  %v340_v44 = vsel %vm2990_vm6, %v2982_v55, %v334_v47  ;;  %v349_v49 = vsel %vm2996_vm7, %v2994_v12, %v343_v39  ;;  %v3044_v20 = vadd.f32 %v331_v46, %v211_v50  ;;  %v3085_v46 = vld [vmem:[#allocation10 + $0x60] sm:$0xff] }
  0xe0   :  { %v3048_v21 = vadd.f32 %v340_v44, %v212_v54  ;;  %v358_v17 = vsel %vm3004_vm8, %v355_v41, %v352_v29  ;;  %v3054_v62 = vadd.f32 %v349_v49, %v3708_v33  ;;  %v234_v14 = vand.u32 2147483647, %v3028_v37  ;;  %v3088_v49 = vld [vmem:[#allocation10 + $0x68] sm:$0xff]  ;;  %v3102_v33 = vld [vmem:[#allocation11] sm:$0xff] }
  0xe1   :  { %v2182_v55 = vpop.eup %2181  ;;  %v3058_v50 = vadd.f32 %v358_v17, %v3709_v13  ;;  %v643_v51 = vmul.f32 50.0, %v627_v6  ;;  %v467_v57 = vmul.f32 %v451_v19, %v3044_v20  ;;  %v644_v28 = vmul.f32 50.0, %v628_v45 }
  0xe2   :  { %v2184_v54 = vpop.eup %2183  ;;  %v548_v12 = vmul.f32 0.6931472, %v2182_v55  ;;  %2068 = vmatpush3.bf16.msra.mxu0 %v735_v59  ;;  %v468_v58 = vmul.f32 %v452_v15, %v3048_v21  ;;  %v469_v23 = vmul.f32 %v453_v4, %v3054_v62  ;;  %v359_v2 = vadd.f32 1.0, %v3030_v52  ;;  %v3092_v4 = vld [vmem:[#allocation10 + $0x70] sm:$0xff] }
  0xe3   :  { %v550_v63 = vmul.f32 0.6931472, %v2184_v54  ;;  %2069 = vmatprep.subr.bf16.mxu0 %v3690_v0  ;;  %v470_v24 = vmul.f32 %v454_v40, %v3058_v50  ;;  %v483_v35 = vadd.f32 %v467_v57, %v179_v26  ;;  %v645_v6 = vmul.f32 50.0, %v629_v7 }
  0xe4   :  { %v2186_v27 = vpop.eup %2185  ;;  %v579_v1 = vsub.f32 -2.3025851, %v548_v12  ;;  %v484_v3 = vadd.f32 %v468_v58, %v180_v53  ;;  %v485_v9 = vadd.f32 %v469_v23, %v181_v60  ;;  %v646_v45 = vmul.f32 50.0, %v630_v56  ;;  %v3100_v53 = vld [vmem:[#allocation10 + $0x78] sm:$0xff]  ;;  %v3106_v12 = vld [vmem:[#allocation11 + $0x8] sm:$0xff] }
  0xe5   :  { %v2188_v43 = vpop.eup %2187  ;;  %v580_v18 = vsub.f32 -2.3025851, %v550_v63  ;;  %v552_v38 = vmul.f32 0.6931472, %v2186_v27  ;;  %v486_v41 = vadd.f32 %v470_v24, %v182_v8  ;;  %2193 = vlog2.f32 %v359_v2 }
  0xe6   :  { %v3067_v10 = vpop.eup %2189  ;;  %v3069_v11 = vadd.f32 %v643_v51, %v579_v1  ;;  %v554_v5 = vmul.f32 0.6931472, %v2188_v43  ;;  %v736_v16 = vpack.c.bf16 %v484_v3, %v483_v35  ;;  %v362_v36 = vmul.f32 -0.5, %v3030_v52 }
  0xe7   :  { %v3071_v25 = vadd.f32 %v644_v28, %v580_v18  ;;  %v581_v22 = vsub.f32 -2.3025851, %v552_v38  ;;  %v250_v7 = vsub.f32 0.0, %v234_v14  ;;  %v737_v34 = vpack.c.bf16 %v486_v41, %v485_v9 }
  0xe8   :  { %v3073_v32 = vpop.eup %2191  ;;  %v582_v42 = vsub.f32 -2.3025851, %v554_v5  ;;  %2070 = vmatpush3.bf16.msra.mxu0 %v736_v16  ;;  %v365_v39 = vand.u32 2147483647, %v3030_v52  ;;  %v368_v56 = vadd.f32 1.0, %v3067_v10  ;;  %v371_v29 = vmul.f32 -0.5, %v3067_v10 }
  0xe9   :  { %v3076_v48 = vadd.f32 %v645_v6, %v581_v22  ;;  %2071 = vmatprep.subr.bf16.mxu0 %v3690_v0  ;;  %v377_v59 = vadd.f32 1.0, %v3073_v32  ;;  %v363_v44 = vadd.f32 1.0, %v362_v36  ;;  %v374_v19 = vand.u32 2147483647, %v3067_v10  ;;  %v455_v5 = vld [vmem:[#allocation14 + $0x40] sm:$0xff] }
  0xea   :  { %v3079_v47 = vadd.f32 %v646_v45, %v582_v42  ;;  %2195 = vlog2.f32 %v368_v56  ;;  %v277_v15 = vmul.f32 1.442695, %v250_v7  ;;  %v380_v17 = vmul.f32 -0.5, %v3073_v32  ;;  %v3123_v45 = vld [vmem:[#allocation11 + $0x10] sm:$0xff] }
  0xeb   :  { %2197 = vlog2.f32 %v377_v59  ;;  %v215_v40 = vmax.f32 %v2916_v30, 0.0  ;;  %v216_v55 = vmax.f32 %v2918_v31, 0.0  ;;  %vm3096_vm9 = vcmp.lt.f32.partialorder %v365_v39, 0.0004427343  ;;  %v183_v59 = vld [vmem:[#allocation5 + $0x40] sm:$0xff] }
  0xec   :  { %2072 = vmatpush3.bf16.msra.mxu0 %v737_v34  ;;  %2199 = vpow2.f32 %v277_v15  ;;  %v372_v13 = vadd.f32 1.0, %v371_v29  ;;  %v235_v14 = vand.u32 2147483647, %v3085_v46  ;;  %v236_v54 = vand.u32 2147483647, %v3088_v49  ;;  %v3150_v34 = vld [vmem:[#allocation11 + $0x28] sm:$0xff] }
  0xed   :  { %2073 = vmatprep.subr.bf16.mxu0 %v3690_v0  ;;  %v364_v30 = vmul.f32 %v3030_v52, %v363_v44  ;;  %vm3109_vm10 = vcmp.lt.f32.partialorder %v374_v19, 0.0004427343  ;;  %v383_v51 = vand.u32 2147483647, %v3073_v32  ;;  %v237_v57 = vand.u32 2147483647, %v3092_v4 }
  0xee   :  { %v381_v58 = vadd.f32 1.0, %v380_v17  ;;  %v251_v60 = vsub.f32 0.0, %v235_v14  ;;  %v252_v63 = vsub.f32 0.0, %v236_v54  ;;  %v238_v28 = vand.u32 2147483647, %v3100_v53  ;;  %v456_v19 = vld [vmem:[#allocation14 + $0x48] sm:$0xff] }
  0xef   :  { %v2194_v23 = vpop.eup %2193  ;;  %v217_v24 = vmax.f32 %v2953_v61, 0.0  ;;  %v253_v27 = vsub.f32 0.0, %v237_v57  ;;  %v831_v1 = vand.u32 2147483647, %v3102_v33  ;;  %v832_v52 = vand.u32 2147483647, %v3106_v12 }
  0xf0   :  { %v361_v35 = vmul.f32 0.6931472, %v2194_v23  ;;  %v279_v3 = vmul.f32 1.442695, %v251_v60  ;;  %v281_v8 = vmul.f32 1.442695, %v252_v63  ;;  %v373_v9 = vmul.f32 %v3067_v10, %v372_v13 }
  0xf1   :  { %v254_v2 = vsub.f32 0.0, %v238_v28  ;;  %v283_v43 = vmul.f32 1.442695, %v253_v27  ;;  %v847_v18 = vsub.f32 0.0, %v831_v1  ;;  %v848_v38 = vsub.f32 0.0, %v832_v52  ;;  %v184_v14 = vld [vmem:[#allocation5 + $0x48] sm:$0xff] }
  0xf2   :  { %v367_v6 = vsel %vm3096_vm9, %v364_v30, %v361_v35  ;;  %v382_v61 = vmul.f32 %v3073_v32, %v381_v58  ;;  %2201 = vpow2.f32 %v279_v3  ;;  %vm3125_vm11 = vcmp.lt.f32.partialorder %v383_v51, 0.0004427343  ;;  %v457_v57 = vld [vmem:[#allocation14 + $0x50] sm:$0xff]  ;;  %v3135_v58 = vld [vmem:[#allocation11 + $0x18] sm:$0xff] }
  0xf3   :  { %v439_v22 = vadd.f32 %v367_v6, %v215_v40  ;;  %2203 = vpow2.f32 %v281_v8  ;;  %v285_v41 = vmul.f32 1.442695, %v254_v2  ;;  %v863_v42 = vmul.f32 1.442695, %v847_v18  ;;  %v185_v8 = vld [vmem:[#allocation5 + $0x50] sm:$0xff] }
  0xf4   :  { %v2196_v16 = vpop.eup %2195  ;;  %2205 = vpow2.f32 %v283_v43  ;;  %v865_v39 = vmul.f32 1.442695, %v848_v38  ;;  %v833_v32 = vand.u32 2147483647, %v3123_v45  ;;  %v218_v26 = vmax.f32 %v3028_v37, 0.0 }
  0xf5   :  { %v2198_v36 = vpop.eup %2197  ;;  %v370_v7 = vmul.f32 0.6931472, %v2196_v16  ;;  %v471_v56 = vmul.f32 %v455_v5, %v439_v22  ;;  %2207 = vpow2.f32 %v285_v41  ;;  %v220_v28 = vmax.f32 %v3088_v49, 0.0  ;;  %v3148_v22 = vld [vmem:[#allocation11 + $0x20] sm:$0xff] }
  0xf6   :  { %v2200_v10 = vpop.eup %2199  ;;  %v379_v29 = vmul.f32 0.6931472, %v2198_v36  ;;  %2209 = vpow2.f32 %v863_v42  ;;  %v849_v63 = vsub.f32 0.0, %v833_v32  ;;  %v221_v23 = vmax.f32 %v3092_v4, 0.0 }
  0xf7   :  { %v376_v44 = vsel %vm3109_vm10, %v373_v9, %v370_v7  ;;  %v386_v15 = vadd.f32 1.0, %v2200_v10  ;;  %v389_v17 = vmul.f32 -0.5, %v2200_v10  ;;  %v392_v30 = vand.u32 2147483647, %v2200_v10 }
  0xf8   :  { %v440_v40 = vadd.f32 %v376_v44, %v216_v55  ;;  %v385_v13 = vsel %vm3125_vm11, %v382_v61, %v379_v29  ;;  %v487_v60 = vadd.f32 %v471_v56, %v183_v59  ;;  %v219_v55 = vmax.f32 %v3085_v46, 0.0  ;;  %v188_v46 = vld [vmem:[#allocation5 + $0x68] sm:$0xff] }
  0xf9   :  { %2211 = vlog2.f32 %v386_v15  ;;  %v390_v54 = vadd.f32 1.0, %v389_v17  ;;  %v441_v51 = vadd.f32 %v385_v13, %v217_v24  ;;  %v222_v27 = vmax.f32 %v3100_v53, 0.0 }
  0xfa   :  { %v472_v31 = vmul.f32 %v456_v19, %v440_v40  ;;  %2213 = vpow2.f32 %v865_v39  ;;  %v834_v35 = vand.u32 2147483647, %v3135_v58  ;;  %v867_v24 = vmul.f32 1.442695, %v849_v63 }
  0xfb   :  { %v473_v52 = vmul.f32 %v457_v57, %v441_v51  ;;  %v391_v2 = vmul.f32 %v2200_v10, %v390_v54  ;;  %vm3142_vm12 = vcmp.lt.f32.partialorder %v392_v30, 0.0004427343  ;;  %v815_v18 = vmax.f32 %v3102_v33, 0.0 }
  0xfc   :  { %v488_v1 = vadd.f32 %v472_v31, %v184_v14  ;;  %v2202_v3 = vpop.eup %2201  ;;  %v816_v38 = vmax.f32 %v3106_v12, 0.0  ;;  %2215 = vpow2.f32 %v867_v24  ;;  %v850_v29 = vsub.f32 0.0, %v834_v35 }
  0xfd   :  { %v2204_v6 = vpop.eup %2203  ;;  %v395_v5 = vadd.f32 1.0, %v2202_v3  ;;  %v398_v61 = vmul.f32 -0.5, %v2202_v3  ;;  %v401_v16 = vand.u32 2147483647, %v2202_v3  ;;  %v3152_v10 = vadd.f32 %v473_v52, %v185_v8 }
  0xfe   :  { %v738_v9 = vpack.c.bf16 %v488_v1, %v487_v60  ;;  %v2206_v41 = vpop.eup %2205  ;;  %v404_v42 = vadd.f32 1.0, %v2204_v6  ;;  %v407_v36 = vmul.f32 -0.5, %v2204_v6  ;;  %v410_v7 = vand.u32 2147483647, %v2204_v6 }
  0xff   :  { %v2208_v39 = vpop.eup %2207  ;;  %2217 = vlog2.f32 %v395_v5  ;;  %v413_v56 = vadd.f32 1.0, %v2206_v41  ;;  %v399_v32 = vadd.f32 1.0, %v398_v61  ;;  %v416_v59 = vmul.f32 -0.5, %v2206_v41 }
 0x100   :  { %2074 = vmatpush3.bf16.msra.mxu0 %v738_v9  ;;  %2219 = vlog2.f32 %v404_v42  ;;  %v835_v44 = vand.u32 2147483647, %v3148_v22  ;;  %v2210_v19 = vpop.eup %2209  ;;  %vm3156_vm13 = vcmp.lt.f32.partialorder %v401_v16, 0.0004427343  ;;  %v422_v17 = vadd.f32 1.0, %v2208_v39  ;;  %v458_v9 = vld [vmem:[#allocation14 + $0x58] sm:$0xff] }
 0x101   :  { %2075 = vmatprep.subr.bf16.mxu0 %v3690_v0  ;;  %2221 = vlog2.f32 %v413_v56  ;;  %v836_v40 = vand.u32 2147483647, %v3150_v34  ;;  %v408_v14 = vadd.f32 1.0, %v407_v36  ;;  %vm3161_vm14 = vcmp.lt.f32.partialorder %v410_v7, 0.0004427343  ;;  %v186_v56 = vld [vmem:[#allocation5 + $0x58] sm:$0xff] }
 0x102   :  { %v419_v30 = vand.u32 2147483647, %v2206_v41  ;;  %v425_v51 = vmul.f32 -0.5, %v2208_v39  ;;  %v417_v60 = vadd.f32 1.0, %v416_v59  ;;  %2223 = vlog2.f32 %v422_v17 }
 0x103   :  { %v2212_v13 = vpop.eup %2211  ;;  %v895_v63 = vadd.f32 1.0, %v2210_v19  ;;  %v400_v1 = vmul.f32 %v2202_v3, %v399_v32  ;;  %v428_v35 = vand.u32 2147483647, %v2208_v39  ;;  %v898_v24 = vmul.f32 -0.5, %v2210_v19 }
 0x104   :  { %v3165_v57 = vpop.eup %2213  ;;  %v388_v31 = vmul.f32 0.6931472, %v2212_v13  ;;  %v426_v52 = vadd.f32 1.0, %v425_v51  ;;  %v901_v5 = vand.u32 2147483647, %v2210_v19  ;;  %v409_v42 = vmul.f32 %v2204_v6, %v408_v14  ;;  %v3229_v6 = vld [vmem:[#allocation11 + $0x38] sm:$0xff] }
 0x105   :  { %2225 = vlog2.f32 %v895_v63  ;;  %v904_v61 = vadd.f32 1.0, %v3165_v57  ;;  %v899_v36 = vadd.f32 1.0, %v898_v24  ;;  %v907_v7 = vmul.f32 -0.5, %v3165_v57 }
 0x106   :  { %v394_v8 = vsel %vm3142_vm12, %v391_v2, %v388_v31  ;;  %v418_v3 = vmul.f32 %v2206_v41, %v417_v60  ;;  %vm3173_vm15 = vcmp.lt.f32.partialorder %v419_v30, 0.0004427343  ;;  %v869_v2 = vmul.f32 1.442695, %v850_v29  ;;  %v3177_v43 = vpop.eup %2215 }
 0x107   :  { %v442_v16 = vadd.f32 %v394_v8, %v218_v26  ;;  %2227 = vlog2.f32 %v904_v61  ;;  %v427_v17 = vmul.f32 %v2208_v39, %v426_v52  ;;  %vm3179_vm1 = vcmp.lt.f32.partialorder %v428_v35, 0.0004427343 }
 0x108   :  { %v908_v37 = vadd.f32 1.0, %v907_v7  ;;  %vm3183_vm2 = vcmp.lt.f32.partialorder %v901_v5, 0.0004427343  ;;  %2229 = vpow2.f32 %v869_v2  ;;  %v913_v41 = vadd.f32 1.0, %v3177_v43 }
 0x109   :  { %v474_v59 = vmul.f32 %v458_v9, %v442_v16  ;;  %v2218_v26 = vpop.eup %2217  ;;  %v851_v14 = vsub.f32 0.0, %v835_v44  ;;  %v900_v31 = vmul.f32 %v2210_v19, %v899_v36  ;;  %v910_v39 = vand.u32 2147483647, %v3165_v57  ;;  %v459_v9 = vld [vmem:[#allocation14 + $0x60] sm:$0xff]  ;;  %v460_v36 = vld [vmem:[#allocation14 + $0x68] sm:$0xff] }
 0x10a   :  { %v2220_v30 = vpop.eup %2219  ;;  %v397_v51 = vmul.f32 0.6931472, %v2218_v26  ;;  %2231 = vlog2.f32 %v913_v41  ;;  %v916_v52 = vmul.f32 -0.5, %v3177_v43  ;;  %v852_v35 = vsub.f32 0.0, %v836_v40  ;;  %v189_v26 = vld [vmem:[#allocation5 + $0x70] sm:$0xff] }
 0x10b   :  { %v490_v29 = vadd.f32 %v474_v59, %v186_v56  ;;  %v2222_v60 = vpop.eup %2221  ;;  %v406_v63 = vmul.f32 0.6931472, %v2220_v30  ;;  %v909_v44 = vmul.f32 %v3165_v57, %v908_v37  ;;  %v919_v7 = vand.u32 2147483647, %v3177_v43  ;;  %v461_v56 = vld [vmem:[#allocation14 + $0x70] sm:$0xff] }
 0x10c   :  { %v403_v8 = vsel %vm3156_vm13, %v400_v1, %v397_v51  ;;  %v415_v5 = vmul.f32 0.6931472, %v2222_v60  ;;  %v2224_v61 = vpop.eup %2223  ;;  %v871_v40 = vmul.f32 1.442695, %v851_v14  ;;  %v873_v2 = vmul.f32 1.442695, %v852_v35 }
 0x10d   :  { %v739_v24 = vpack.c.bf16 %v490_v29, %v3152_v10  ;;  %v412_v19 = vsel %vm3161_vm14, %v409_v42, %v406_v63  ;;  %v443_v16 = vadd.f32 %v403_v8, %v219_v55  ;;  %v187_v10 = vld [vmem:[#allocation5 + $0x60] sm:$0xff]  ;;  %v424_v57 = vmul.f32 0.6931472, %v2224_v61  ;;  %v3217_v63 = vld [vmem:[#allocation11 + $0x30] sm:$0xff]  ;;  %v1056_v8 = vld [vmem:[#allocation16 + $0x8] sm:$0xff] }
 0x10e   :  { %v444_v15 = vadd.f32 %v412_v19, %v220_v28  ;;  %v421_v1 = vsel %vm3173_vm15, %v418_v3, %v415_v5  ;;  %v917_v59 = vadd.f32 1.0, %v916_v52  ;;  %2233 = vpow2.f32 %v871_v40  ;;  %v462_v28 = vld [vmem:[#allocation14 + $0x78] sm:$0xff] }
 0x10f   :  { %2076 = vmatpush3.bf16.msra.mxu0 %v739_v24  ;;  %v2226_v54 = vpop.eup %2225  ;;  %v475_v55 = vmul.f32 %v459_v9, %v443_v16  ;;  %v445_v42 = vadd.f32 %v421_v1, %v221_v23  ;;  %v430_v49 = vsel %vm3179_vm1, %v427_v17, %v424_v57  ;;  %2235 = vpow2.f32 %v873_v2  ;;  %v190_v23 = vld [vmem:[#allocation5 + $0x78] sm:$0xff]  ;;  %v1055_v17 = vld [vmem:[#allocation16] sm:$0xff] }
 0x110   :  { %2077 = vmatprep.subr.bf16.mxu0 %v3690_v0  ;;  %v476_v37 = vmul.f32 %v460_v36, %v444_v15  ;;  %v897_v3 = vmul.f32 0.6931472, %v2226_v54  ;;  %v446_v14 = vadd.f32 %v430_v49, %v222_v27  ;;  %vm3210_vm3 = vcmp.lt.f32.partialorder %v910_v39, 0.0004427343  ;;  %v783_v24 = vld [vmem:[#allocation7] sm:$0xff]  ;;  %v174_v36 = vld [vmem:[#allocation2] sm:$0xff] }
 0x111   :  { %v2228_v32 = vpop.eup %2227  ;;  %v491_v41 = vadd.f32 %v475_v55, %v187_v10  ;;  %v477_v30 = vmul.f32 %v461_v56, %v445_v42  ;;  %v817_v60 = vmax.f32 %v3123_v45, 0.0  ;;  %vm3225_vm4 = vcmp.lt.f32.partialorder %v919_v7, 0.0004427343  ;;  %v784_v7 = vld [vmem:[#allocation7 + $0x8] sm:$0xff]  ;;  %v1057_v54 = vld [vmem:[#allocation16 + $0x10] sm:$0xff] }
 0x112   :  { %v492_v4 = vadd.f32 %v476_v37, %v188_v46  ;;  %v903_v51 = vsel %vm3183_vm2, %v900_v31, %v897_v3  ;;  %v906_v13 = vmul.f32 0.6931472, %v2228_v32  ;;  %v3219_v52 = vpop.eup %2229  ;;  %v478_v53 = vmul.f32 %v462_v28, %v446_v14  ;;  %v3255_v14 = vld [vmem:[#allocation11 + $0x40] sm:$0xff] }
 0x113   :  { %v493_v27 = vadd.f32 %v477_v30, %v189_v26  ;;  %v3223_v39 = vadd.f32 %v903_v51, %v815_v18  ;;  %v918_v9 = vmul.f32 %v3177_v43, %v917_v59  ;;  %v922_v5 = vadd.f32 1.0, %v3219_v52  ;;  %v785_v30 = vld [vmem:[#allocation7 + $0x10] sm:$0xff]  ;;  %v3259_v51 = vld [vmem:[#allocation11 + $0x48] sm:$0xff] }
 0x114   :  { %v740_v31 = vpack.c.bf16 %v492_v4, %v491_v41  ;;  %v912_v45 = vsel %vm3210_vm3, %v909_v44, %v906_v13  ;;  %v2232_v61 = vpop.eup %2231  ;;  %v494_v33 = vadd.f32 %v478_v53, %v190_v23  ;;  %v837_v16 = vand.u32 2147483647, %v3217_v63 }
 0x115   :  { %v3237_v18 = vadd.f32 %v912_v45, %v816_v38  ;;  %v1071_v19 = vmul.f32 %v1055_v17, %v3223_v39  ;;  %v915_v40 = vmul.f32 0.6931472, %v2232_v61  ;;  %2237 = vlog2.f32 %v922_v5  ;;  %v3281_v5 = vld [vmem:[#allocation11 + $0x60] sm:$0xff] }
 0x116   :  { %2078 = vmatpush3.bf16.msra.mxu0 %v740_v31  ;;  %v838_v44 = vand.u32 2147483647, %v3229_v6  ;;  %v741_v43 = vpack.c.bf16 %v494_v33, %v493_v27  ;;  %v925_v12 = vmul.f32 -0.5, %v3219_v52  ;;  %v733_v57 = vpack.c.bf16 %v174_v36, %v174_v36  ;;  %v3264_v27 = vld [vmem:[#allocation11 + $0x50] sm:$0xff] }
 0x117   :  { %2079 = vmatprep.subr.bf16.mxu0 %v3690_v0  ;;  %v1072_v10 = vmul.f32 %v1056_v8, %v3237_v18  ;;  %v1087_v15 = vadd.f32 %v1071_v19, %v783_v24  ;;  %v921_v38 = vsel %vm3225_vm4, %v918_v9, %v915_v40  ;;  %v853_v46 = vsub.f32 0.0, %v837_v16  ;;  %v3274_v24 = vld [vmem:[#allocation11 + $0x58] sm:$0xff] }
 0x118   :  { %v2234_v1 = vpop.eup %2233  ;;  %v3247_v2 = vadd.f32 %v921_v38, %v817_v60  ;;  %v854_v37 = vsub.f32 0.0, %v838_v44  ;;  %v926_v49 = vadd.f32 1.0, %v925_v12  ;;  %v928_v28 = vand.u32 2147483647, %v3219_v52 }
 0x119   :  { %v1088_v56 = vadd.f32 %v1072_v10, %v784_v7  ;;  %v3249_v55 = vpop.eup %2235  ;;  %v931_v42 = vadd.f32 1.0, %v2234_v1  ;;  %v934_v59 = vmul.f32 -0.5, %v2234_v1  ;;  %v937_v41 = vand.u32 2147483647, %v2234_v1  ;;  %v1058_v10 = vld [vmem:[#allocation16 + $0x18] sm:$0xff] }
 0x11a   :  { %2080 = vmatpush3.bf16.msra.mxu0 %v741_v43  ;;  %v940_v3 = vadd.f32 1.0, %v3249_v55  ;;  %v1073_v32 = vmul.f32 %v1057_v54, %v3247_v2  ;;  %v818_v29 = vmax.f32 %v3135_v58, 0.0  ;;  %v943_v4 = vmul.f32 -0.5, %v3249_v55 }
 0x11b   :  { %v1322_v26 = vpack.c.bf16 %v1088_v56, %v1087_v15  ;;  %2105 = vmatprep.subr.bf16.mxu0 %v3690_v0  ;;  %2239 = vlog2.f32 %v931_v42  ;;  %v875_v23 = vmul.f32 1.442695, %v853_v46  ;;  %v819_v13 = vmax.f32 %v3148_v22, 0.0 }
 0x11c   :  { %2241 = vlog2.f32 %v940_v3  ;;  %v820_v17 = vmax.f32 %v3150_v34, 0.0  ;;  %v935_v60 = vadd.f32 1.0, %v934_v59  ;;  %v877_v53 = vmul.f32 1.442695, %v854_v37 }
 0x11d   :  { %2082 = vmatmul.mubr.bf16.vlgmr.msra.gmra.mrb[0].mxu0 %v733_v57  ;;  %2086 = vmatpush3.bf16.msra.mxu1 %v1322_v26  ;;  %v927_v58 = vmul.f32 %v3219_v52, %v926_v49  ;;  %vm3269_vm5 = vcmp.lt.f32.partialorder %v928_v28, 0.0004427343  ;;  %2243 = vpow2.f32 %v875_v23  ;;  %v839_v31 = vand.u32 2147483647, %v3255_v14  ;;  %v3283_v52 = vld [vmem:[#allocation11 + $0x68] sm:$0xff] }
 0x11e   :  { %2087 = vmatprep.subr.bf16.mxu1 %v3690_v0  ;;  %2121 = vmatprep.mubr.msk.bf16.mxu0 %vm2676_vm0, %v3690_v0  ;;  %v1089_v45 = vadd.f32 %v1073_v32, %v785_v30  ;;  %vm3276_vm6 = vcmp.lt.f32.partialorder %v937_v41, 0.0004427343  ;;  %2245 = vpow2.f32 %v877_v53  ;;  %v840_v9 = vand.u32 2147483647, %v3259_v51  ;;  %v1059_v53 = vld [vmem:[#allocation16 + $0x20] sm:$0xff] }
 0x11f   :  { %v2238_v22 = vpop.eup %2237  ;;  %v944_v33 = vadd.f32 1.0, %v943_v4  ;;  %v855_v19 = vsub.f32 0.0, %v839_v31  ;;  %v841_v16 = vand.u32 2147483647, %v3264_v27  ;;  %v936_v36 = vmul.f32 %v2234_v1, %v935_v60  ;;  %v786_v1 = vld [vmem:[#allocation7 + $0x18] sm:$0xff] }
 0x120   :  { %v924_v61 = vmul.f32 0.6931472, %v2238_v22  ;;  %v946_v7 = vand.u32 2147483647, %v3249_v55  ;;  %v856_v40 = vsub.f32 0.0, %v840_v9  ;;  %v822_v34 = vmax.f32 %v3229_v6, 0.0 }
 0x121   :  { %v842_v44 = vand.u32 2147483647, %v3274_v24  ;;  %v879_v15 = vmul.f32 1.442695, %v855_v19  ;;  %v857_v12 = vsub.f32 0.0, %v841_v16  ;;  %v945_v42 = vmul.f32 %v3249_v55, %v944_v33  ;;  %v787_v19 = vld [vmem:[#allocation7 + $0x20] sm:$0xff] }
 0x122   :  { %v930_v43 = vsel %vm3269_vm5, %v927_v58, %v924_v61  ;;  %v843_v38 = vand.u32 2147483647, %v3281_v5  ;;  %v881_v56 = vmul.f32 1.442695, %v856_v40  ;;  %v844_v46 = vand.u32 2147483647, %v3283_v52 }
 0x123   :  { %v3291_v57 = vadd.f32 %v930_v43, %v818_v29  ;;  %v858_v54 = vsub.f32 0.0, %v842_v44  ;;  %2247 = vpow2.f32 %v879_v15  ;;  %v883_v59 = vmul.f32 1.442695, %v857_v12  ;;  %v1060_v61 = vld [vmem:[#allocation16 + $0x28] sm:$0xff] }
 0x124   :  { %v859_v37 = vsub.f32 0.0, %v843_v38  ;;  %2249 = vpow2.f32 %v881_v56  ;;  %v860_v3 = vsub.f32 0.0, %v844_v46  ;;  %vm3296_vm0 = vcmp.lt.f32.partialorder %v946_v7, 0.0004427343  ;;  %v788_v40 = vld [vmem:[#allocation7 + $0x28] sm:$0xff] }
 0x125   :  { %v2240_v26 = vpop.eup %2239  ;;  %v1074_v49 = vmul.f32 %v1058_v10, %v3291_v57  ;;  %v885_v28 = vmul.f32 1.442695, %v858_v54  ;;  %2251 = vpow2.f32 %v883_v59  ;;  %v821_v15 = vmax.f32 %v3217_v63, 0.0 }
 0x126   :  { %v2242_v32 = vpop.eup %2241  ;;  %v933_v41 = vmul.f32 0.6931472, %v2240_v26  ;;  %v887_v29 = vmul.f32 1.442695, %v859_v37  ;;  %v889_v58 = vmul.f32 1.442695, %v860_v3 }
 0x127   :  { %v1090_v4 = vadd.f32 %v1074_v49, %v786_v1  ;;  %v942_v23 = vmul.f32 0.6931472, %v2242_v32  ;;  %2253 = vpow2.f32 %v885_v28  ;;  %v2244_v55 = vpop.eup %2243  ;;  %v823_v56 = vmax.f32 %v3255_v14, 0.0 }
 0x128   :  { %v939_v60 = vsel %vm3276_vm6, %v936_v36, %v933_v41  ;;  %2255 = vpow2.f32 %v887_v29  ;;  %v2246_v35 = vpop.eup %2245  ;;  %v949_v33 = vadd.f32 1.0, %v2244_v55  ;;  %v952_v44 = vmul.f32 -0.5, %v2244_v55 }
 0x129   :  { %v1323_v31 = vpack.c.bf16 %v1090_v4, %v1089_v45  ;;  %v948_v22 = vsel %vm3296_vm0, %v945_v42, %v942_v23  ;;  %v1043_v9 = vadd.f32 %v939_v60, %v819_v13  ;;  %v958_v7 = vadd.f32 1.0, %v2246_v35 }
 0x12a   :  { %v1044_v16 = vadd.f32 %v948_v22, %v820_v17  ;;  %2257 = vlog2.f32 %v949_v33  ;;  %v961_v45 = vmul.f32 -0.5, %v2246_v35  ;;  %v955_v12 = vand.u32 2147483647, %v2244_v55 }
 0x12b   :  { %2088 = vmatpush3.bf16.msra.mxu1 %v1323_v31  ;;  %v1075_v8 = vmul.f32 %v1059_v53, %v1043_v9  ;;  %2259 = vlog2.f32 %v958_v7  ;;  %v964_v38 = vand.u32 2147483647, %v2246_v35  ;;  %v953_v42 = vadd.f32 1.0, %v952_v44 }
 0x12c   :  { %2089 = vmatprep.subr.bf16.mxu1 %v3690_v0  ;;  %v1076_v36 = vmul.f32 %v1060_v61, %v1044_v16  ;;  %2261 = vpow2.f32 %v889_v58  ;;  %v962_v59 = vadd.f32 1.0, %v961_v45  ;;  %v824_v63 = vmax.f32 %v3259_v51, 0.0  ;;  %v1061_v45 = vld [vmem:[#allocation16 + $0x30] sm:$0xff] }
 0x12d   :  { %v1091_v43 = vadd.f32 %v1075_v8, %v787_v19  ;;  %v2248_v13 = vpop.eup %2247  ;;  %v825_v6 = vmax.f32 %v3264_v27, 0.0  ;;  %v826_v41 = vmax.f32 %v3274_v24, 0.0  ;;  %vm3324_vm7 = vcmp.lt.f32.partialorder %v955_v12, 0.0004427343  ;;  %v795_v24 = vld [vmem:[#allocation7 + $0x60] sm:$0xff] }
 0x12e   :  { %v1092_v10 = vadd.f32 %v1076_v36, %v788_v40  ;;  %v3309_v17 = vpop.eup %2249  ;;  %v967_v54 = vadd.f32 1.0, %v2248_v13  ;;  %v970_v3 = vmul.f32 -0.5, %v2248_v13  ;;  %v973_v32 = vand.u32 2147483647, %v2248_v13 }
 0x12f   :  { %v3312_v46 = vpop.eup %2251  ;;  %v976_v37 = vadd.f32 1.0, %v3309_v17  ;;  %v979_v29 = vmul.f32 -0.5, %v3309_v17  ;;  %v954_v23 = vmul.f32 %v2244_v55, %v953_v42  ;;  %v963_v60 = vmul.f32 %v2246_v35, %v962_v59  ;;  %v792_v42 = vld [vmem:[#allocation7 + $0x48] sm:$0xff] }
 0x130   :  { %v1324_v1 = vpack.c.bf16 %v1092_v10, %v1091_v43  ;;  %2263 = vlog2.f32 %v967_v54  ;;  %v985_v49 = vadd.f32 1.0, %v3312_v46  ;;  %vm3330_vm8 = vcmp.lt.f32.partialorder %v964_v38, 0.0004427343 }
 0x131   :  { %v3315_v26 = vpop.eup %2253  ;;  %2265 = vlog2.f32 %v976_v37  ;;  %v988_v58 = vmul.f32 -0.5, %v3312_v46  ;;  %v982_v22 = vand.u32 2147483647, %v3309_v17  ;;  %v971_v16 = vadd.f32 1.0, %v970_v3  ;;  %v789_v37 = vld [vmem:[#allocation7 + $0x30] sm:$0xff] }
 0x132   :  { %v3320_v28 = vpop.eup %2255  ;;  %2090 = vmatpush3.bf16.msra.mxu1 %v1324_v1  ;;  %2267 = vlog2.f32 %v985_v49  ;;  %v994_v4 = vadd.f32 1.0, %v3315_v26  ;;  %v997_v9 = vmul.f32 -0.5, %v3315_v26  ;;  %vm3338_vm9 = vcmp.lt.f32.partialorder %v973_v32, 0.0004427343  ;;  %v1062_v1 = vld [vmem:[#allocation16 + $0x38] sm:$0xff] }
 0x133   :  { %2091 = vmatprep.subr.bf16.mxu1 %v3690_v0  ;;  %v1003_v61 = vadd.f32 1.0, %v3320_v28  ;;  %v1006_v35 = vmul.f32 -0.5, %v3320_v28  ;;  %v980_v8 = vadd.f32 1.0, %v979_v29  ;;  %v991_v36 = vand.u32 2147483647, %v3312_v46  ;;  %v790_v29 = vld [vmem:[#allocation7 + $0x38] sm:$0xff] }
 0x134   :  { %v2258_v31 = vpop.eup %2257  ;;  %2269 = vlog2.f32 %v994_v4  ;;  %v989_v43 = vadd.f32 1.0, %v988_v58  ;;  %v1000_v10 = vand.u32 2147483647, %v3315_v26  ;;  %vm3352_vm10 = vcmp.lt.f32.partialorder %v982_v22, 0.0004427343 }
 0x135   :  { %v2260_v33 = vpop.eup %2259  ;;  %v951_v19 = vmul.f32 0.6931472, %v2258_v31  ;;  %2271 = vlog2.f32 %v1003_v61  ;;  %v998_v59 = vadd.f32 1.0, %v997_v9  ;;  %v972_v3 = vmul.f32 %v2248_v13, %v971_v16 }
 0x136   :  { %v3343_v7 = vpop.eup %2261  ;;  %v960_v40 = vmul.f32 0.6931472, %v2260_v33  ;;  %v1007_v32 = vadd.f32 1.0, %v1006_v35  ;;  %vm3357_vm11 = vcmp.lt.f32.partialorder %v991_v36, 0.0004427343  ;;  %v990_v22 = vmul.f32 %v3312_v46, %v989_v43  ;;  %v1063_v35 = vld [vmem:[#allocation16 + $0x40] sm:$0xff] }
 0x137   :  { %v957_v44 = vsel %vm3324_vm7, %v954_v23, %v951_v19  ;;  %v1012_v12 = vadd.f32 1.0, %v3343_v7  ;;  %v981_v23 = vmul.f32 %v3309_v17, %v980_v8  ;;  %vm3363_vm12 = vcmp.lt.f32.partialorder %v1000_v10, 0.0004427343 }
 0x138   :  { %v966_v38 = vsel %vm3330_vm8, %v963_v60, %v960_v40  ;;  %v1045_v54 = vadd.f32 %v957_v44, %v821_v15  ;;  %v1015_v15 = vmul.f32 -0.5, %v3343_v7  ;;  %v999_v17 = vmul.f32 %v3315_v26, %v998_v59 }
 0x139   :  { %v1046_v49 = vadd.f32 %v966_v38, %v822_v34  ;;  %2273 = vlog2.f32 %v1012_v12  ;;  %v1009_v33 = vand.u32 2147483647, %v3320_v28  ;;  %v1008_v8 = vmul.f32 %v3320_v28, %v1007_v32  ;;  %v791_v12 = vld [vmem:[#allocation7 + $0x40] sm:$0xff] }
 0x13a   :  { %v2264_v30 = vpop.eup %2263  ;;  %v1077_v4 = vmul.f32 %v1061_v45, %v1045_v54  ;;  %v1064_v45 = vld [vmem:[#allocation16 + $0x48] sm:$0xff]  ;;  %v1016_v43 = vadd.f32 1.0, %v1015_v15  ;;  %v1018_v26 = vand.u32 2147483647, %v3343_v7  ;;  %v1065_v54 = vld [vmem:[#allocation16 + $0x50] sm:$0xff]  ;;  %v828_v53 = vmax.f32 %v3283_v52, 0.0 }
 0x13b   :  { %v2266_v60 = vpop.eup %2265  ;;  %v1078_v58 = vmul.f32 %v1062_v1, %v1046_v49  ;;  %v969_v31 = vmul.f32 0.6931472, %v2264_v30  ;;  %vm3384_vm13 = vcmp.lt.f32.partialorder %v1009_v33, 0.0004427343  ;;  %v814_v33 = vld [vmem:[#allocation11 + $0x78] sm:$0xff] }
 0x13c   :  { %v2268_v34 = vpop.eup %2267  ;;  %v1093_v9 = vadd.f32 %v1077_v4, %v789_v37  ;;  %v978_v61 = vmul.f32 0.6931472, %v2266_v60  ;;  %vm1019_vm14 = vcmp.lt.f32.partialorder %v1018_v26, 0.0004427343  ;;  %v1067_v60 = vld [vmem:[#allocation16 + $0x60] sm:$0xff] }
 0x13d   :  { %v1094_v19 = vadd.f32 %v1078_v58, %v790_v29  ;;  %v975_v16 = vsel %vm3338_vm9, %v972_v3, %v969_v31  ;;  %v987_v40 = vmul.f32 0.6931472, %v2268_v34  ;;  %v1066_v3 = vld [vmem:[#allocation16 + $0x58] sm:$0xff] }
 0x13e   :  { %v2270_v46 = vpop.eup %2269  ;;  %v984_v36 = vsel %vm3352_vm10, %v981_v23, %v978_v61  ;;  %v1047_v44 = vadd.f32 %v975_v16, %v823_v56  ;;  %v827_v56 = vmax.f32 %v3281_v5, 0.0  ;;  %v1017_v5 = vmul.f32 %v3343_v7, %v1016_v43  ;;  %v794_v23 = vld [vmem:[#allocation7 + $0x58] sm:$0xff]  ;;  %v1068_v61 = vld [vmem:[#allocation16 + $0x68] sm:$0xff] }
 0x13f   :  { %v1325_v10 = vpack.c.bf16 %v1094_v19, %v1093_v9  ;;  %v1048_v55 = vadd.f32 %v984_v36, %v824_v63  ;;  %v993_v38 = vsel %vm3357_vm11, %v990_v22, %v987_v40  ;;  %v996_v28 = vmul.f32 0.6931472, %v2270_v46  ;;  %v2272_v1 = vpop.eup %2271  ;;  %v793_v63 = vld [vmem:[#allocation7 + $0x50] sm:$0xff]  ;;  %v796_v40 = vld [vmem:[#allocation7 + $0x68] sm:$0xff] }
 0x140   :  { %v1079_v59 = vmul.f32 %v1063_v35, %v1047_v44  ;;  %v1049_v14 = vadd.f32 %v993_v38, %v825_v6  ;;  %v1005_v32 = vmul.f32 0.6931472, %v2272_v1  ;;  %v846_v16 = vand.u32 2147483647, %v814_v33 }
 0x141   :  { %2092 = vmatpush3.bf16.msra.mxu1 %v1325_v10  ;;  %v1080_v51 = vmul.f32 %v1064_v45, %v1048_v55  ;;  %v1002_v49 = vsel %vm3363_vm12, %v999_v17, %v996_v28  ;;  %v813_v17 = vld [vmem:[#allocation11 + $0x70] sm:$0xff] }
 0x142   :  { %2093 = vmatprep.subr.bf16.mxu1 %v3690_v0  ;;  %v1095_v30 = vadd.f32 %v1079_v59, %v791_v12  ;;  %v1050_v27 = vadd.f32 %v1002_v49, %v826_v41  ;;  %v1081_v6 = vmul.f32 %v1065_v54, %v1049_v14  ;;  %v1011_v15 = vsel %vm3384_vm13, %v1008_v8, %v1005_v32 }
 0x143   :  { %v2274_v29 = vpop.eup %2273  ;;  %v1096_v4 = vadd.f32 %v1080_v51, %v792_v42  ;;  %v1051_v13 = vadd.f32 %v1011_v15, %v827_v56  ;;  %v845_v52 = vand.u32 2147483647, %v813_v17  ;;  %v862_v44 = vsub.f32 0.0, %v846_v16 }
 0x144   :  { %v1082_v58 = vmul.f32 %v1066_v3, %v1050_v27  ;;  %v1097_v31 = vadd.f32 %v1081_v6, %v793_v63  ;;  %v1014_v22 = vmul.f32 0.6931472, %v2274_v29  ;;  %v829_v32 = vmax.f32 %v813_v17, 0.0 }
 0x145   :  { %v1326_v34 = vpack.c.bf16 %v1096_v4, %v1095_v30  ;;  %v1083_v7 = vmul.f32 %v1067_v60, %v1051_v13  ;;  %v861_v36 = vsub.f32 0.0, %v845_v52  ;;  %v893_v26 = vmul.f32 1.442695, %v862_v44  ;;  %v797_v60 = vld [vmem:[#allocation7 + $0x70] sm:$0xff] }
 0x146   :  { %v1098_v41 = vadd.f32 %v1082_v58, %v794_v23  ;;  %v1020_v9 = vsel %vm1019_vm14, %v1017_v5, %v1014_v22  ;;  %v830_v30 = vmax.f32 %v814_v33, 0.0  ;;  %v1069_v23 = vld [vmem:[#allocation16 + $0x70] sm:$0xff]  ;;  %v798_v58 = vld [vmem:[#allocation7 + $0x78] sm:$0xff] }
 0x147   :  { %2094 = vmatpush3.bf16.msra.mxu1 %v1326_v34  ;;  %v1052_v19 = vadd.f32 %v1020_v9, %v828_v53  ;;  %v1099_v46 = vadd.f32 %v1083_v7, %v795_v24  ;;  %v891_v43 = vmul.f32 1.442695, %v861_v36  ;;  %v1070_v53 = vld [vmem:[#allocation16 + $0x78] sm:$0xff]  ;;  %v3400_v24 = vld [vmem:[#allocation13] sm:$0xff]  ;;  %v3406_v7 = vld [vmem:[#allocation13 + $0x10] sm:$0xff] }
 0x148   :  { %2095 = vmatprep.subr.bf16.mxu1 %v3690_v0  ;;  %v1327_v35 = vpack.c.bf16 %v1098_v41, %v1097_v31  ;;  %v3402_v41 = vld [vmem:[#allocation13 + $0x8] sm:$0xff]  ;;  %v1419_v9 = vand.u32 2147483647, %v3400_v24  ;;  %v3408_v33 = vld [vmem:[#allocation13 + $0x18] sm:$0xff] }
 0x149   :  { %v1084_v8 = vmul.f32 %v1068_v61, %v1052_v19  ;;  %2275 = vpow2.f32 %v891_v43  ;;  %v1420_v61 = vand.u32 2147483647, %v3402_v41  ;;  %v1421_v19 = vand.u32 2147483647, %v3406_v7 }
 0x14a   :  { %2277 = vpow2.f32 %v893_v26  ;;  %v1435_v17 = vsub.f32 0.0, %v1419_v9  ;;  %v1422_v16 = vand.u32 2147483647, %v3408_v33 }
 0x14b   :  { %2096 = vmatpush3.bf16.msra.mxu1 %v1327_v35  ;;  %v1100_v45 = vadd.f32 %v1084_v8, %v796_v40  ;;  %v1436_v52 = vsub.f32 0.0, %v1420_v61  ;;  %v1437_v40 = vsub.f32 0.0, %v1421_v19  ;;  %v3412_v8 = vld [vmem:[#allocation13 + $0x20] sm:$0xff] }
 0x14c   :  { %2097 = vmatprep.subr.bf16.mxu1 %v3690_v0  ;;  %v1451_v35 = vmul.f32 1.442695, %v1435_v17  ;;  %v1438_v44 = vsub.f32 0.0, %v1422_v16  ;;  %v1423_v43 = vand.u32 2147483647, %v3412_v8 }
 0x14d   :  { %v1328_v10 = vpack.c.bf16 %v1100_v45, %v1099_v46  ;;  %v3414_v46 = vld [vmem:[#allocation13 + $0x28] sm:$0xff]  ;;  %v1453_v36 = vmul.f32 1.442695, %v1436_v52  ;;  %v1455_v45 = vmul.f32 1.442695, %v1437_v40 }
 0x14e   :  { %v1424_v26 = vand.u32 2147483647, %v3414_v46 }
 0x14f   :  { %2098 = vmatpush3.bf16.msra.mxu1 %v1328_v10  ;;  %v1457_v10 = vmul.f32 1.442695, %v1438_v44 }
 0x150   :  { %2099 = vmatprep.subr.bf16.mxu1 %v3690_v0 }
 0x153   :  { %v2276_v12 = vpop.eup %2275 }
 0x154   :  { %v2278_v55 = vpop.eup %2277  ;;  %v1021_v38 = vadd.f32 1.0, %v2276_v12  ;;  %v1024_v54 = vmul.f32 -0.5, %v2276_v12  ;;  %v1027_v56 = vand.u32 2147483647, %v2276_v12 }
 0x155   :  { %v1030_v28 = vadd.f32 1.0, %v2278_v55  ;;  %v1033_v1 = vmul.f32 -0.5, %v2278_v55  ;;  %v1036_v37 = vand.u32 2147483647, %v2278_v55 }
 0x156   :  { %2279 = vlog2.f32 %v1021_v38  ;;  %v1025_v42 = vadd.f32 1.0, %v1024_v54  ;;  %vm1028_vm15 = vcmp.lt.f32.partialorder %v1027_v56, 0.0004427343  ;;  %v3418_v38 = vld [vmem:[#allocation13 + $0x30] sm:$0xff]  ;;  %v3424_v56 = vld [vmem:[#allocation13 + $0x40] sm:$0xff] }
 0x157   :  { %2281 = vlog2.f32 %v1030_v28  ;;  %v1034_v59 = vadd.f32 1.0, %v1033_v1  ;;  %vm1037_vm1 = vcmp.lt.f32.partialorder %v1036_v37, 0.0004427343  ;;  %v3420_v28 = vld [vmem:[#allocation13 + $0x38] sm:$0xff]  ;;  %v1425_v54 = vand.u32 2147483647, %v3418_v38 }
 0x158   :  { %v1026_v49 = vmul.f32 %v2276_v12, %v1025_v42  ;;  %2283 = vpow2.f32 %v1451_v35  ;;  %v1439_v12 = vsub.f32 0.0, %v1423_v43  ;;  %v3426_v37 = vld [vmem:[#allocation13 + $0x48] sm:$0xff] }
 0x159   :  { %v1035_v3 = vmul.f32 %v2278_v55, %v1034_v59  ;;  %2285 = vpow2.f32 %v1453_v36  ;;  %v1440_v55 = vsub.f32 0.0, %v1424_v26  ;;  %v1426_v59 = vand.u32 2147483647, %v3420_v28 }
 0x15a   :  { %2287 = vpow2.f32 %v1455_v45  ;;  %v1459_v1 = vmul.f32 1.442695, %v1439_v12 }
 0x15b   :  { %2289 = vpow2.f32 %v1457_v10  ;;  %v1461_v42 = vmul.f32 1.442695, %v1440_v55 }
 0x15c   :  { %2291 = vpow2.f32 %v1459_v1 }
 0x15d   :  { %2293 = vpow2.f32 %v1461_v42  ;;  %v1645_v42 = vld [vmem:[#allocation17 + $0x10] sm:$0xff] }
 0x160   :  { %v2280_v14 = vpop.eup %2279 }
 0x161   :  { %v2282_v51 = vpop.eup %2281  ;;  %v1023_v63 = vmul.f32 0.6931472, %v2280_v14  ;;  %v1441_v14 = vsub.f32 0.0, %v1425_v54 }
 0x162   :  { %v1032_v27 = vmul.f32 0.6931472, %v2282_v51  ;;  %v1442_v51 = vsub.f32 0.0, %v1426_v59 }
 0x163   :  { %v1029_v6 = vsel %vm1028_vm15, %v1026_v49, %v1023_v63  ;;  %v1463_v63 = vmul.f32 1.442695, %v1441_v14  ;;  %v1427_v49 = vand.u32 2147483647, %v3424_v56 }
 0x164   :  { %v1038_v5 = vsel %vm1037_vm1, %v1035_v3, %v1032_v27  ;;  %v1053_v29 = vadd.f32 %v1029_v6, %v829_v32  ;;  %v1428_v3 = vand.u32 2147483647, %v3426_v37  ;;  %v1403_v32 = vmax.f32 %v3400_v24, 0.0  ;;  %v3495_v24 = vld [vmem:[#allocation8 + $0x8] sm:$0xff] }
 0x165   :  { %v1054_v4 = vadd.f32 %v1038_v5, %v830_v30  ;;  %v1404_v30 = vmax.f32 %v3402_v41, 0.0  ;;  %v1465_v27 = vmul.f32 1.442695, %v1442_v51  ;;  %v1405_v6 = vmax.f32 %v3406_v7, 0.0 }
 0x166   :  { %v1085_v15 = vmul.f32 %v1069_v23, %v1053_v29  ;;  %v1406_v5 = vmax.f32 %v3408_v33, 0.0  ;;  %2295 = vpow2.f32 %v1463_v63  ;;  %v1444_v9 = vsub.f32 0.0, %v1428_v3 }
 0x167   :  { %v1086_v31 = vmul.f32 %v1070_v53, %v1054_v4  ;;  %v2284_v4 = vpop.eup %2283  ;;  %2297 = vpow2.f32 %v1465_v27 }
 0x168   :  { %v1101_v22 = vadd.f32 %v1085_v15, %v797_v60  ;;  %v1443_v15 = vsub.f32 0.0, %v1427_v49  ;;  %v3437_v60 = vld [vmem:[#allocation13 + $0x50] sm:$0xff]  ;;  %v1469_v55 = vmul.f32 1.442695, %v1444_v9 }
 0x169   :  { %v1102_v13 = vadd.f32 %v1086_v31, %v798_v58  ;;  %v3439_v58 = vld [vmem:[#allocation13 + $0x58] sm:$0xff]  ;;  %v2286_v31 = vpop.eup %2285  ;;  %v1429_v36 = vand.u32 2147483647, %v3437_v60 }
 0x16a   :  { %v2288_v61 = vpop.eup %2287  ;;  %v1492_v17 = vadd.f32 1.0, %v2286_v31  ;;  %v1495_v19 = vmul.f32 -0.5, %v2286_v31  ;;  %v1498_v52 = vand.u32 2147483647, %v2286_v31  ;;  %v1430_v44 = vand.u32 2147483647, %v3439_v58 }
 0x16b   :  { %v1329_v34 = vpack.c.bf16 %v1102_v13, %v1101_v22  ;;  %v1483_v22 = vadd.f32 1.0, %v2284_v4  ;;  %v1486_v13 = vmul.f32 -0.5, %v2284_v4  ;;  %v2290_v35 = vpop.eup %2289  ;;  %v1501_v40 = vadd.f32 1.0, %v2288_v61 }
 0x16c   :  { %v1504_v43 = vmul.f32 -0.5, %v2288_v61  ;;  %v1467_v26 = vmul.f32 1.442695, %v1443_v15  ;;  %v1510_v12 = vadd.f32 1.0, %v2290_v35  ;;  %v2292_v54 = vpop.eup %2291  ;;  %v1496_v1 = vadd.f32 1.0, %v1495_v19 }
 0x16d   :  { %2100 = vmatpush3.bf16.msra.mxu1 %v1329_v34  ;;  %v1489_v34 = vand.u32 2147483647, %v2284_v4  ;;  %2299 = vlog2.f32 %v1483_v22  ;;  %v1487_v45 = vadd.f32 1.0, %v1486_v13  ;;  %vm3448_vm3 = vcmp.lt.f32.partialorder %v1498_v52, 0.0004427343  ;;  %v2294_v51 = vpop.eup %2293 }
 0x16e   :  { %2301 = vlog2.f32 %v1492_v17  ;;  %v1507_v59 = vand.u32 2147483647, %v2288_v61  ;;  %v1513_v14 = vmul.f32 -0.5, %v2290_v35  ;;  %v1505_v63 = vadd.f32 1.0, %v1504_v43 }
 0x16f   :  { %vm3444_vm2 = vcmp.lt.f32.partialorder %v1489_v34, 0.0004427343  ;;  %2303 = vlog2.f32 %v1501_v40  ;;  %v1519_v49 = vadd.f32 1.0, %v2292_v54  ;;  %v1522_v3 = vmul.f32 -0.5, %v2292_v54 }
 0x170   :  { %2305 = vlog2.f32 %v1510_v12  ;;  %v1488_v27 = vmul.f32 %v2284_v4, %v1487_v45  ;;  %v1514_v15 = vadd.f32 1.0, %v1513_v14  ;;  %v1516_v22 = vand.u32 2147483647, %v2290_v35  ;;  %v3452_v34 = vpop.eup %2295 }
 0x171   :  { %v1525_v13 = vand.u32 2147483647, %v2292_v54  ;;  %2307 = vlog2.f32 %v1519_v49  ;;  %v1523_v9 = vadd.f32 1.0, %v1522_v3  ;;  %v1528_v17 = vadd.f32 1.0, %v2294_v51  ;;  %v3454_v52 = vpop.eup %2297  ;;  %v1648_v3 = vld [vmem:[#allocation17 + $0x28] sm:$0xff] }
 0x172   :  { %v1531_v19 = vmul.f32 -0.5, %v2294_v51  ;;  %v1497_v40 = vmul.f32 %v2286_v31, %v1496_v1  ;;  %vm3456_vm4 = vcmp.lt.f32.partialorder %v1507_v59, 0.0004427343  ;;  %v1534_v43 = vand.u32 2147483647, %v2294_v51 }
 0x173   :  { %v1537_v12 = vadd.f32 1.0, %v3452_v34  ;;  %v1506_v4 = vmul.f32 %v2288_v61, %v1505_v63  ;;  %2309 = vlog2.f32 %v1528_v17  ;;  %v1540_v14 = vmul.f32 -0.5, %v3452_v34 }
 0x174   :  { %v1532_v45 = vadd.f32 1.0, %v1531_v19  ;;  %v1515_v0 = vmul.f32 %v2290_v35, %v1514_v15  ;;  %vm3462_vm5 = vcmp.lt.f32.partialorder %v1516_v22, 0.0004427343  ;;  %v1546_v31 = vadd.f32 1.0, %v3454_v52 }
 0x175   :  { %2311 = vlog2.f32 %v1537_v12  ;;  %v1524_v59 = vmul.f32 %v2292_v54, %v1523_v9  ;;  %vm3467_vm6 = vcmp.lt.f32.partialorder %v1525_v13, 0.0004427343  ;;  %vm3471_vm0 = vcmp.lt.f32.partialorder %v1534_v43, 0.0004427343  ;;  %v1643_v43 = vld [vmem:[#allocation17] sm:$0xff] }
 0x176   :  { %v1541_v63 = vadd.f32 1.0, %v1540_v14  ;;  %v1543_v15 = vand.u32 2147483647, %v3452_v34  ;;  %2313 = vlog2.f32 %v1546_v31  ;;  %v1445_v22 = vsub.f32 0.0, %v1429_v36  ;;  %v3487_v31 = vld [vmem:[#allocation8] sm:$0xff] }
 0x177   :  { %v2300_v1 = vpop.eup %2299  ;;  %v1533_v53 = vmul.f32 %v2294_v51, %v1532_v45  ;;  %v1549_v54 = vmul.f32 -0.5, %v3454_v52  ;;  %v1552_v13 = vand.u32 2147483647, %v3454_v52  ;;  %2315 = vpow2.f32 %v1467_v26  ;;  %v1644_v51 = vld [vmem:[#allocation17 + $0x8] sm:$0xff] }
 0x178   :  { %v2302_v17 = vpop.eup %2301  ;;  %v1485_v35 = vmul.f32 0.6931472, %v2300_v1  ;;  %v1446_v14 = vsub.f32 0.0, %v1430_v44  ;;  %v1542_v45 = vmul.f32 %v3452_v34, %v1541_v63  ;;  %2317 = vpow2.f32 %v1469_v55 }
 0x179   :  { %v2304_v19 = vpop.eup %2303  ;;  %v1494_v12 = vmul.f32 0.6931472, %v2302_v17  ;;  %v1550_v34 = vadd.f32 1.0, %v1549_v54  ;;  %vm3518_vm7 = vcmp.lt.f32.partialorder %v1543_v15, 0.0004427343 }
 0x17a   :  { %v1491_v9 = vsel %vm3444_vm2, %v1488_v27, %v1485_v35  ;;  %v1503_v23 = vmul.f32 0.6931472, %v2304_v19  ;;  %v2306_v29 = vpop.eup %2305  ;;  %v1471_v27 = vmul.f32 1.442695, %v1445_v22  ;;  %v1473_v63 = vmul.f32 1.442695, %v1446_v14 }
 0x17b   :  { %v1500_v1 = vsel %vm3448_vm3, %v1497_v40, %v1494_v12  ;;  %v3484_v36 = vadd.f32 %v1491_v9, %v1403_v32  ;;  %v1512_v26 = vmul.f32 0.6931472, %v2306_v29  ;;  %v2308_v40 = vpop.eup %2307  ;;  %v3514_v19 = vld [vmem:[#allocation8 + $0x18] sm:$0xff]  ;;  %v1647_v12 = vld [vmem:[#allocation17 + $0x20] sm:$0xff]  ;;  %v3766_v9 = vmax.f32 %v3412_v8, 0.0 }
 0x17c   :  { %v3491_v10 = vadd.f32 %v1500_v1, %v1404_v30  ;;  %v1509_v44 = vsel %vm3456_vm4, %v1506_v4, %v1503_v23  ;;  %v3503_v30 = vld [vmem:[#allocation8 + $0x10] sm:$0xff]  ;;  %v1646_v23 = vld [vmem:[#allocation17 + $0x18] sm:$0xff]  ;;  %v1521_v16 = vmul.f32 0.6931472, %v2308_v40  ;;  %2319 = vpow2.f32 %v1471_v27 }
 0x17d   :  { %v1659_v32 = vmul.f32 %v1643_v43, %v3484_v36  ;;  %v3500_v55 = vadd.f32 %v1509_v44, %v1405_v6  ;;  %v1518_v29 = vsel %vm3462_vm5, %v1515_v0, %v1512_v26  ;;  %v2310_v4 = vpop.eup %2309  ;;  %2321 = vpow2.f32 %v1473_v63  ;;  %v1375_v44 = vld [vmem:[#allocation8 + $0x20] sm:$0xff]  ;;  %v1649_v63 = vld [vmem:[#allocation17 + $0x30] sm:$0xff] }
 0x17e   :  { %v1660_v41 = vmul.f32 %v1644_v51, %v3491_v10  ;;  %v3510_v7 = vadd.f32 %v1518_v29, %v1406_v5  ;;  %v1527_v0 = vsel %vm3467_vm6, %v1524_v59, %v1521_v16  ;;  %v1530_v49 = vmul.f32 0.6931472, %v2310_v4 }
 0x17f   :  { %v1675_v17 = vadd.f32 %v1659_v32, %v3487_v31  ;;  %v1661_v6 = vmul.f32 %v1645_v42, %v3500_v55  ;;  %v2312_v35 = vpop.eup %2311  ;;  %v1631_v43 = vadd.f32 %v1527_v0, %v3766_v9  ;;  %v1551_v15 = vmul.f32 %v3454_v52, %v1550_v34  ;;  %v1376_v52 = vld [vmem:[#allocation8 + $0x28] sm:$0xff] }
 0x180   :  { %v1676_v22 = vadd.f32 %v1660_v41, %v3495_v24  ;;  %v1662_v33 = vmul.f32 %v1646_v23, %v3510_v7  ;;  %v1539_v14 = vmul.f32 0.6931472, %v2312_v35  ;;  %v2314_v1 = vpop.eup %2313  ;;  %v1536_v59 = vsel %vm3471_vm0, %v1533_v53, %v1530_v49  ;;  %v3538_v41 = vld [vmem:[#allocation13 + $0x60] sm:$0xff]  ;;  %v3540_v53 = vld [vmem:[#allocation13 + $0x68] sm:$0xff] }
 0x181   :  { %v1677_v5 = vadd.f32 %v1661_v6, %v3503_v30  ;;  %vm3529_vm8 = vcmp.lt.f32.partialorder %v1552_v13, 0.0004427343  ;;  %v3769_v27 = vmax.f32 %v3414_v46, 0.0  ;;  %v1663_v40 = vmul.f32 %v1647_v12, %v1631_v43  ;;  %v2316_v61 = vpop.eup %2315  ;;  %v1378_v43 = vld [vmem:[#allocation8 + $0x38] sm:$0xff] }
 0x182   :  { %v1895_v51 = vpack.c.bf16 %v1676_v22, %v1675_v17  ;;  %v1678_v42 = vadd.f32 %v1662_v33, %v3514_v19  ;;  %v1545_v32 = vsel %vm3518_vm7, %v1542_v45, %v1539_v14  ;;  %v1548_v13 = vmul.f32 0.6931472, %v2314_v1  ;;  %v2318_v23 = vpop.eup %2317  ;;  %v1377_v45 = vld [vmem:[#allocation8 + $0x30] sm:$0xff]  ;;  %v1650_v22 = vld [vmem:[#allocation17 + $0x38] sm:$0xff] }
 0x183   :  { %v1632_v8 = vadd.f32 %v1536_v59, %v3769_v27  ;;  %v3770_v34 = vmax.f32 %v3418_v38, 0.0  ;;  %v3771_v16 = vmov 0.0   ;;  %v1679_v17 = vadd.f32 %v1663_v40, %v1375_v44 }
 0x184   :  { %2106 = vmatpush3.bf16.msra.mxu0 %v1895_v51  ;;  %v1896_v46 = vpack.c.bf16 %v1678_v42, %v1677_v5  ;;  %v1555_v6 = vadd.f32 1.0, %v2316_v61  ;;  %v1554_v35 = vsel %vm3529_vm8, %v1551_v15, %v1548_v13  ;;  %v1431_v49 = vand.u32 2147483647, %v3538_v41 }
 0x185   :  { %v1633_v29 = vadd.f32 %v1545_v32, %v3770_v34  ;;  %2107 = vmatprep.subr.bf16.mxu0 %v3771_v16  ;;  %v1664_v4 = vmul.f32 %v1648_v3, %v1632_v8  ;;  %v1432_v12 = vand.u32 2147483647, %v3540_v53  ;;  %v3772_v38 = vmax.f32 %v3420_v28, 0.0 }
 0x186   :  { %2323 = vlog2.f32 %v1555_v6  ;;  %v1564_v9 = vadd.f32 1.0, %v2318_v23  ;;  %v2320_v5 = vpop.eup %2319  ;;  %v1558_v14 = vmul.f32 -0.5, %v2316_v61  ;;  %v1567_v3 = vmul.f32 -0.5, %v2318_v23 }
 0x187   :  { %v1665_v0 = vmul.f32 %v1649_v63, %v1633_v29  ;;  %v1680_v54 = vadd.f32 %v1664_v4, %v1376_v52  ;;  %v1634_v33 = vadd.f32 %v1554_v35, %v3772_v38  ;;  %v2322_v1 = vpop.eup %2321  ;;  %v1573_v15 = vadd.f32 1.0, %v2320_v5 }
 0x188   :  { %2108 = vmatpush3.bf16.msra.mxu0 %v1896_v46  ;;  %2325 = vlog2.f32 %v1564_v9  ;;  %v1447_v26 = vsub.f32 0.0, %v1431_v49  ;;  %v1448_v42 = vsub.f32 0.0, %v1432_v12  ;;  %v1582_v28 = vadd.f32 1.0, %v2322_v1 }
 0x189   :  { %2109 = vmatprep.subr.bf16.mxu0 %v3771_v16  ;;  %v1897_v51 = vpack.c.bf16 %v1680_v54, %v1679_v17  ;;  %v1666_v44 = vmul.f32 %v1650_v22, %v1634_v33  ;;  %v1681_v59 = vadd.f32 %v1665_v0, %v1377_v45  ;;  %v1559_v8 = vadd.f32 1.0, %v1558_v14 }
 0x18a   :  { %2327 = vlog2.f32 %v1573_v15  ;;  %v1561_v32 = vand.u32 2147483647, %v2316_v61  ;;  %v1576_v63 = vmul.f32 -0.5, %v2320_v5  ;;  %v1568_v52 = vadd.f32 1.0, %v1567_v3  ;;  %v1652_v3 = vld [vmem:[#allocation17 + $0x48] sm:$0xff] }
 0x18b   :  { %v1682_v27 = vadd.f32 %v1666_v44, %v1378_v43  ;;  %2329 = vlog2.f32 %v1582_v28  ;;  %v1585_v13 = vmul.f32 -0.5, %v2322_v1  ;;  %v1475_v34 = vmul.f32 1.442695, %v1447_v26  ;;  %v1651_v43 = vld [vmem:[#allocation17 + $0x40] sm:$0xff] }
 0x18c   :  { %2110 = vmatpush3.bf16.msra.mxu0 %v1897_v51  ;;  %v1477_v29 = vmul.f32 1.442695, %v1448_v42  ;;  %v1570_v46 = vand.u32 2147483647, %v2318_v23  ;;  %v1560_v4 = vmul.f32 %v2316_v61, %v1559_v8  ;;  %v1411_v6 = vmax.f32 %v3424_v56, 0.0  ;;  %v1380_v8 = vld [vmem:[#allocation8 + $0x48] sm:$0xff] }
 0x18d   :  { %2111 = vmatprep.subr.bf16.mxu0 %v3771_v16  ;;  %v1898_v40 = vpack.c.bf16 %v1682_v27, %v1681_v59  ;;  %2331 = vpow2.f32 %v1475_v34  ;;  %vm1562_vm9 = vcmp.lt.f32.partialorder %v1561_v32, 0.0004427343  ;;  %v1577_v45 = vadd.f32 1.0, %v1576_v63  ;;  %v1379_v59 = vld [vmem:[#allocation8 + $0x40] sm:$0xff]  ;;  %v1653_v63 = vld [vmem:[#allocation17 + $0x50] sm:$0xff] }
 0x18e   :  { %2333 = vpow2.f32 %v1477_v29  ;;  %v1569_v22 = vmul.f32 %v2318_v23, %v1568_v52  ;;  %v1579_v0 = vand.u32 2147483647, %v2320_v5  ;;  %v1586_v49 = vadd.f32 1.0, %v1585_v13  ;;  %v1654_v29 = vld [vmem:[#allocation17 + $0x58] sm:$0xff] }
 0x18f   :  { %v1412_v54 = vmax.f32 %v3426_v37, 0.0  ;;  %vm3556_vm10 = vcmp.lt.f32.partialorder %v1570_v46, 0.0004427343  ;;  %v1588_v61 = vand.u32 2147483647, %v2322_v1  ;;  %v1413_v56 = vmax.f32 %v3437_v60, 0.0 }
 0x190   :  { %2112 = vmatpush3.bf16.msra.mxu0 %v1898_v40  ;;  %v2324_v17 = vpop.eup %2323  ;;  %v1578_v51 = vmul.f32 %v2320_v5, %v1577_v45  ;;  %v1414_v37 = vmax.f32 %v3439_v58, 0.0  ;;  %vm1580_vm11 = vcmp.lt.f32.partialorder %v1579_v0, 0.0004427343  ;;  %v1587_v15 = vmul.f32 %v2322_v1, %v1586_v49  ;;  %v1381_v58 = vld [vmem:[#allocation8 + $0x50] sm:$0xff] }
 0x191   :  { %2113 = vmatprep.subr.bf16.mxu0 %v3771_v16  ;;  %v1557_v35 = vmul.f32 0.6931472, %v2324_v17  ;;  %vm1589_vm12 = vcmp.lt.f32.partialorder %v1588_v61, 0.0004427343  ;;  %vm1954_vm4 = vcmask 0  }
 0x192   :  { %v2326_v12 = vpop.eup %2325 }
 0x193   :  { %v1563_v33 = vsel %vm1562_vm9, %v1560_v4, %v1557_v35  ;;  %v1566_v9 = vmul.f32 0.6931472, %v2326_v12 }
 0x194   :  { %v1635_v14 = vadd.f32 %v1563_v33, %v1411_v6  ;;  %v2328_v44 = vpop.eup %2327  ;;  %v1382_v6 = vld [vmem:[#allocation8 + $0x58] sm:$0xff] }
 0x195   :  { %v1572_v23 = vsel %vm3556_vm10, %v1569_v22, %v1566_v9  ;;  %v2330_v26 = vpop.eup %2329  ;;  %v1575_v28 = vmul.f32 0.6931472, %v2328_v44  ;;  %v1415_v44 = vmax.f32 %v3538_v41, 0.0 }
 0x196   :  { %v1636_v42 = vadd.f32 %v1572_v23, %v1412_v54  ;;  %v1667_v27 = vmul.f32 %v1651_v43, %v1635_v14  ;;  %v1584_v40 = vmul.f32 0.6931472, %v2330_v26 }
 0x197   :  { %v1581_v5 = vsel %vm1580_vm11, %v1578_v51, %v1575_v28  ;;  %v2332_v52 = vpop.eup %2331 }
 0x198   :  { %v1668_v32 = vmul.f32 %v1652_v3, %v1636_v42  ;;  %v1683_v60 = vadd.f32 %v1667_v27, %v1379_v59  ;;  %v1590_v13 = vsel %vm1589_vm12, %v1587_v15, %v1584_v40  ;;  %v1637_v34 = vadd.f32 %v1581_v5, %v1413_v56  ;;  %v2334_v46 = vpop.eup %2333  ;;  %v1655_v42 = vld [vmem:[#allocation17 + $0x60] sm:$0xff] }
 0x199   :  { %v1638_v17 = vadd.f32 %v1590_v13, %v1414_v37  ;;  %v1591_v1 = vadd.f32 1.0, %v2332_v52  ;;  %v1600_v35 = vadd.f32 1.0, %v2334_v46  ;;  %v1594_v12 = vmul.f32 -0.5, %v2332_v52  ;;  %v1383_v40 = vld [vmem:[#allocation8 + $0x60] sm:$0xff] }
 0x19a   :  { %v1684_v4 = vadd.f32 %v1668_v32, %v1380_v8  ;;  %v1669_v45 = vmul.f32 %v1653_v63, %v1637_v34  ;;  %v1603_v38 = vmul.f32 -0.5, %v2334_v46  ;;  %v1597_v9 = vand.u32 2147483647, %v2332_v52  ;;  %v1656_v8 = vld [vmem:[#allocation17 + $0x68] sm:$0xff] }
 0x19b   :  { %v1670_v0 = vmul.f32 %v1654_v29, %v1638_v17  ;;  %2335 = vlog2.f32 %v1591_v1  ;;  %v1595_v33 = vadd.f32 1.0, %v1594_v12  ;;  %v1606_v14 = vand.u32 2147483647, %v2334_v46  ;;  %v1401_v17 = vld [vmem:[#allocation13 + $0x70] sm:$0xff]  ;;  %v1402_v1 = vld [vmem:[#allocation13 + $0x78] sm:$0xff] }
 0x19c   :  { %v1899_v22 = vpack.c.bf16 %v1684_v4, %v1683_v60  ;;  %v1685_v49 = vadd.f32 %v1669_v45, %v1381_v58  ;;  %2337 = vlog2.f32 %v1600_v35  ;;  %v1604_v43 = vadd.f32 1.0, %v1603_v38  ;;  %v1384_v60 = vld [vmem:[#allocation8 + $0x68] sm:$0xff] }
 0x19d   :  { %v1686_v54 = vadd.f32 %v1670_v0, %v1382_v6  ;;  %v1596_v56 = vmul.f32 %v2332_v52, %v1595_v33  ;;  %vm1598_vm13 = vcmp.lt.f32.partialorder %v1597_v9, 0.0004427343  ;;  %v1416_v3 = vmax.f32 %v3540_v53, 0.0 }
 0x19e   :  { %2114 = vmatpush3.bf16.msra.mxu0 %v1899_v22  ;;  %v1605_v59 = vmul.f32 %v2334_v46, %v1604_v43  ;;  %vm1607_vm14 = vcmp.lt.f32.partialorder %v1606_v14, 0.0004427343  ;;  %v1433_v6 = vand.u32 2147483647, %v1401_v17  ;;  %v1434_v45 = vand.u32 2147483647, %v1402_v1 }
 0x19f   :  { %2115 = vmatprep.subr.bf16.mxu0 %v3771_v16  ;;  %v1900_v61 = vpack.c.bf16 %v1686_v54, %v1685_v49 }
 0x1a0   :  { %v1449_v35 = vsub.f32 0.0, %v1433_v6  ;;  %v1450_v22 = vsub.f32 0.0, %v1434_v45  ;;  %v600_v6 = vmul.f32 %v3048_v21, %v3048_v21  ;;  %v2375_v45 = vld [vmem:[#allocation5 + $0x20] sm:$0xff] }
 0x1a2   :  { %2116 = vmatpush3.bf16.msra.mxu0 %v1900_v61  ;;  %v1479_v0 = vmul.f32 1.442695, %v1449_v35  ;;  %v1481_v49 = vmul.f32 1.442695, %v1450_v22  ;;  %v615_v35 = vmul.f32 %v2375_v45, %v2375_v45  ;;  %v2376_v22 = vld [vmem:[#allocation5 + $0x28] sm:$0xff] }
 0x1a3   :  { %2117 = vmatprep.subr.bf16.mxu0 %v3771_v16 }
 0x1a4   :  { %2339 = vpow2.f32 %v1479_v0  ;;  %v616_v0 = vmul.f32 %v2376_v22, %v2376_v22 }
 0x1a5   :  { %v2336_v51 = vpop.eup %2335  ;;  %2341 = vpow2.f32 %v1481_v49  ;;  %v512_v49 = vlaneseq }
 0x1a6   :  { %v2338_v23 = vpop.eup %2337  ;;  %v1593_v37 = vmul.f32 0.6931472, %v2336_v51 }
 0x1a7   :  { %v1602_v15 = vmul.f32 0.6931472, %v2338_v23 }
 0x1a8   :  { %v1599_v26 = vsel %vm1598_vm13, %v1596_v56, %v1593_v37  ;;  %v1417_v37 = vmax.f32 %v1401_v17, 0.0 }
 0x1a9   :  { %v1608_v27 = vsel %vm1607_vm14, %v1605_v59, %v1602_v15  ;;  %v1639_v28 = vadd.f32 %v1599_v26, %v1415_v44  ;;  %v1418_v15 = vmax.f32 %v1402_v1, 0.0  ;;  %v599_v1 = vmul.f32 %v3044_v20, %v3044_v20 }
 0x1aa   :  { %v1640_v32 = vadd.f32 %v1608_v27, %v1416_v3 }
 0x1ab   :  { %v1671_v5 = vmul.f32 %v1655_v42, %v1639_v28 }
 0x1ac   :  { %v1672_v63 = vmul.f32 %v1656_v8, %v1640_v32  ;;  %v1658_v32 = vld [vmem:[#allocation17 + $0x78] sm:$0xff] }
 0x1ad   :  { %v1687_v52 = vadd.f32 %v1671_v5, %v1383_v40  ;;  %v1657_v40 = vld [vmem:[#allocation17 + $0x70] sm:$0xff] }
 0x1ae   :  { %v1688_v41 = vadd.f32 %v1672_v63, %v1384_v60  ;;  %v2340_v12 = vpop.eup %2339  ;;  %v1385_v5 = vld [vmem:[#allocation8 + $0x70] sm:$0xff]  ;;  %v1386_v63 = vld [vmem:[#allocation8 + $0x78] sm:$0xff] }
 0x1af   :  { %v2342_v54 = vpop.eup %2341  ;;  %v1612_v61 = vmul.f32 -0.5, %v2340_v12  ;;  %v1615_v56 = vand.u32 2147483647, %v2340_v12 }
 0x1b0   :  { %v1901_v13 = vpack.c.bf16 %v1688_v41, %v1687_v52  ;;  %v1618_v38 = vadd.f32 1.0, %v2342_v54  ;;  %v1621_v33 = vmul.f32 -0.5, %v2342_v54  ;;  %v1624_v51 = vand.u32 2147483647, %v2342_v54 }
 0x1b1   :  { %v1613_v9 = vadd.f32 1.0, %v1612_v61  ;;  %vm1616_vm15 = vcmp.lt.f32.partialorder %v1615_v56, 0.0004427343  ;;  %v632_v61 = vadd.f32 %v616_v0, %v600_v6  ;;  %v1990_v56 = vadd.f32 -0.5, %v3069_v11 }
 0x1b2   :  { %2118 = vmatpush3.bf16.msra.mxu0 %v1901_v13  ;;  %v1622_v43 = vadd.f32 1.0, %v1621_v33  ;;  %vm1625_vm1 = vcmp.lt.f32.partialorder %v1624_v51, 0.0004427343  ;;  %v1184_v33 = vmul.f32 %v3237_v18, %v3237_v18 }
 0x1b3   :  { %2119 = vmatprep.subr.bf16.mxu0 %v3771_v16  ;;  %v1609_v16 = vadd.f32 1.0, %v2340_v12  ;;  %v1614_v23 = vmul.f32 %v2340_v12, %v1613_v9  ;;  %v1183_v12 = vmul.f32 %v3223_v39, %v3223_v39  ;;  %v2378_v9 = vld [vmem:[#allocation7 + $0x8] sm:$0xff] }
 0x1b4   :  { %v1623_v3 = vmul.f32 %v2342_v54, %v1622_v43  ;;  %v2377_v54 = vld [vmem:[#allocation7] sm:$0xff]  ;;  %v1200_v43 = vmul.f32 %v2378_v9, %v2378_v9 }
 0x1b5   :  { %2343 = vlog2.f32 %v1609_v16  ;;  %v1199_v16 = vmul.f32 %v2377_v54, %v2377_v54 }
 0x1b6   :  { %2345 = vlog2.f32 %v1618_v38  ;;  %v631_v38 = vadd.f32 %v615_v35, %v599_v1 }
 0x1b7   :  { %v1215_v51 = vadd.f32 %v1199_v16, %v1183_v12  ;;  %2347 = vlog2.f32 %v3223_v39  ;;  %v1185_v39 = vmul.f32 %v3247_v2, %v3247_v2 }
 0x1b8   :  { %2349 = vlog2.f32 %v3237_v18  ;;  %v1186_v18 = vmul.f32 %v3291_v57, %v3291_v57 }
 0x1b9   :  { %2351 = vlog2.f32 %v3247_v2  ;;  %v602_v2 = vmul.f32 %v3058_v50, %v3058_v50 }
 0x1ba   :  { %2353 = vlog2.f32 %v3291_v57 }
 0x1bb   :  { %2355 = vlog2.f32 %v3044_v20  ;;  %v1756_v20 = vmul.f32 %v3484_v36, %v3484_v36 }
 0x1bc   :  { %2357 = vlog2.f32 %v3048_v21  ;;  %v1758_v21 = vmul.f32 %v3500_v55, %v3500_v55 }
 0x1bd   :  { %2359 = vlog2.f32 %v3054_v62 }
 0x1be   :  { %2361 = vlog2.f32 %v3058_v50 }
 0x1bf   :  { %v2344_v14 = vpop.eup %2343  ;;  %2363 = vlog2.f32 %v3484_v36 }
 0x1c0   :  { %v2346_v44 = vpop.eup %2345  ;;  %v1611_v59 = vmul.f32 0.6931472, %v2344_v14  ;;  %v3577_v14 = vand.u32 127, %v512_v49  ;;  %2365 = vlog2.f32 %v3491_v10 }
 0x1c1   :  { %v1620_v26 = vmul.f32 0.6931472, %v2346_v44  ;;  %v1991_v44 = vadd.f32 -0.5, %v3071_v25  ;;  %v1993_v25 = vadd.f32 -0.5, %v3079_v47  ;;  %v2348_v50 = vpop.eup %2347  ;;  %2367 = vlog2.f32 %v3500_v55 }
 0x1c2   :  { %v1617_v42 = vsel %vm1616_vm15, %v1614_v23, %v1611_v59  ;;  %v2379_v59 = vld [vmem:[#allocation5 + $0x30] sm:$0xff]  ;;  %vm530_vm2 = vcmp.lt.s32.totalorder %v3577_v14, 32  ;;  %v2350_v6 = vpop.eup %2349  ;;  %v1136_v45 = vmul.f32 0.6931472, %v2348_v50  ;;  %2369 = vlog2.f32 %v3510_v7 }
 0x1c3   :  { %v1626_v27 = vsel %vm1625_vm1, %v1623_v3, %v1620_v26  ;;  %v1641_v28 = vadd.f32 %v1617_v42, %v1417_v37  ;;  %v617_v23 = vmul.f32 %v2379_v59, %v2379_v59  ;;  %v2380_v3 = vld [vmem:[#allocation5 + $0x38] sm:$0xff]  ;;  %v3583_v26 = vmul.f32 50.0, %v631_v38  ;;  %v2352_v0 = vpop.eup %2351 }
 0x1c4   :  { %v1642_v8 = vadd.f32 %v1626_v27, %v1418_v15  ;;  %v618_v37 = vmul.f32 %v2380_v3, %v2380_v3  ;;  %v1992_v15 = vadd.f32 -0.5, %v3076_v48  ;;  %v3585_v42 = vmul.f32 50.0, %v632_v61  ;;  %v2354_v36 = vpop.eup %2353 }
 0x1c5   :  { %v1673_v60 = vmul.f32 %v1657_v40, %v1641_v28  ;;  %v1216_v27 = vadd.f32 %v1200_v43, %v1184_v33  ;;  %v2381_v28 = vld [vmem:[#allocation7 + $0x10] sm:$0xff]  ;;  %v1772_v40 = vmul.f32 %v3487_v31, %v3487_v31  ;;  %v691_v48 = vsel %vm530_vm2, %v1990_v56, 0.0  ;;  %v2382_v31 = vld [vmem:[#allocation7 + $0x18] sm:$0xff] }
 0x1c6   :  { %v1674_v52 = vmul.f32 %v1658_v32, %v1642_v8  ;;  %v1201_v11 = vmul.f32 %v2381_v28, %v2381_v28  ;;  %v1231_v8 = vmul.f32 50.0, %v1215_v51  ;;  %v1773_v32 = vmul.f32 %v3495_v24, %v3495_v24 }
 0x1c7   :  { %v1689_v41 = vadd.f32 %v1673_v60, %v1385_v5  ;;  %v692_v47 = vsel %vm530_vm2, %v1991_v44, 0.0  ;;  %v1202_v60 = vmul.f32 %v2382_v31, %v2382_v31  ;;  %v693_v5 = vsel %vm530_vm2, %v1992_v15, 0.0 }
 0x1c8   :  { %v1690_v13 = vadd.f32 %v1674_v52, %v1386_v63  ;;  %v601_v24 = vmul.f32 %v3054_v62, %v3054_v62  ;;  %v694_v63 = vsel %vm530_vm2, %v1993_v25, 0.0  ;;  %v707_v57 = vadd.f32 %v692_v47, %v691_v48 }
 0x1c9   :  { %v1757_v52 = vmul.f32 %v3491_v10, %v3491_v10  ;;  %v1759_v62 = vmul.f32 %v3510_v7, %v3510_v7  ;;  %v1788_v1 = vadd.f32 %v1772_v40, %v1756_v20  ;;  %v1140_v54 = vmul.f32 0.6931472, %v2352_v0  ;;  %v2356_v10 = vpop.eup %2355 }
 0x1ca   :  { %v1167_v16 = vsub.f32 -2.3025851, %v1136_v45  ;;  %v1142_v33 = vmul.f32 0.6931472, %v2354_v36  ;;  %v2358_v51 = vpop.eup %2357  ;;  %v556_v59 = vmul.f32 0.6931472, %v2356_v10 }
 0x1cb   :  { %v1804_v43 = vmul.f32 50.0, %v1788_v1  ;;  %v1169_v44 = vsub.f32 -2.3025851, %v1140_v54  ;;  %v2360_v3 = vpop.eup %2359  ;;  %v558_v7 = vmul.f32 0.6931472, %v2358_v51  ;;  %vm1691_vm3 = vcmp.lt.s32.totalorder %v3577_v14, 8 }
 0x1cc   :  { %v1247_v55 = vadd.f32 %v1231_v8, %v1167_v16  ;;  %v2362_v28 = vpop.eup %2361  ;;  %v560_v40 = vmul.f32 0.6931472, %v2360_v3  ;;  %v583_v48 = vsub.f32 -2.3025851, %v556_v59 }
 0x1cd   :  { %v562_v47 = vmul.f32 0.6931472, %v2362_v28  ;;  %v2364_v31 = vpop.eup %2363 }
 0x1ce   :  { %v2006_v25 = vadd.f32 -0.5, %v1247_v55 }
 0x1cf   :  { %v586_v20 = vsub.f32 -2.3025851, %v562_v47 }
 0x1d0   :  { %v1279_v8 = vsel %vm530_vm2, %v2006_v25, 0.0 }
 0x1f0   :  { %v776_v53 = vpop.f32.mrb[0].mxu0 }
 0x1f1   :  { %v782_v34 = vmax.f32 %v776_v53, 0.0  ;;  %v2083_v29 = vpop.f32.mrb[1].mxu0  ;;  %v1902_v53 = vpack.c.bf16 %v1690_v13, %v1689_v41  ;;  %v1217_v41 = vadd.f32 %v1201_v11, %v1185_v39  ;;  %v1774_v13 = vmul.f32 %v3503_v30, %v3503_v30 }
 0x1f2   :  { %v779_v46 = vpop.f32.mrb[2].mxu0  ;;  %v1789_v30 = vadd.f32 %v1773_v32, %v1757_v52 }
 0x1f3   :  { %v1321_v4 = vpack.c.bf16 %v782_v34, %v782_v34  ;;  %v2084_v58 = vpop.f32.mrb[3].mxu0  ;;  %2120 = vmatpush3.bf16.msra.mxu0 %v1902_v53  ;;  %v1218_v53 = vadd.f32 %v1202_v60, %v1186_v18  ;;  %v1233_v35 = vmul.f32 50.0, %v1217_v41  ;;  %v1790_v22 = vadd.f32 %v1774_v13, %v1758_v21 }
 0x1f4   :  { %v1805_v56 = vmul.f32 50.0, %v1789_v30  ;;  %v584_v18 = vsub.f32 -2.3025851, %v558_v7 }
 0x1f5   :  { %2102 = vmatmul.mubr.bf16.vlgmr.msra.gmra.mrb[0].mxu1 %v1321_v4  ;;  %v1234_v49 = vmul.f32 50.0, %v1218_v53  ;;  %v1249_v11 = vadd.f32 %v1233_v35, %v1169_v44 }
 0x1f6   :  { %v664_v52 = vadd.f32 %v3585_v42, %v584_v18 }
 0x1f7   :  { %v2008_v60 = vadd.f32 -0.5, %v1249_v11 }
 0x1f9   :  { %v1281_v21 = vsel %vm530_vm2, %v2008_v60, 0.0 }
 0x2c8   :  { %v1364_v34 = vpop.f32.mrb[0].mxu1 }
 0x2c9   :  { %v1370_v29 = vmax.f32 %v1364_v34, 0.0  ;;  %v2103_v46 = vpop.f32.mrb[1].mxu1  ;;  %v708_v34 = vadd.f32 %v707_v57, %v693_v5  ;;  %v585_v5 = vsub.f32 -2.3025851, %v560_v40 }
 0x2ca   :  { %v1367_v4 = vpop.f32.mrb[2].mxu1  ;;  %v1232_v46 = vmul.f32 50.0, %v1216_v27 }
 0x2cb   :  { %v1894_v58 = vpack.c.bf16 %v1370_v29, %v1370_v29  ;;  %v2104_v17 = vpop.f32.mrb[3].mxu1  ;;  %v1775_v29 = vmul.f32 %v3514_v19, %v3514_v19  ;;  %v633_v4 = vadd.f32 %v617_v23, %v601_v24  ;;  %v1138_v19 = vmul.f32 0.6931472, %v2350_v6 }
 0x2cc   :  { %v3629_v17 = vadd.f32 %v708_v34, %v694_v63  ;;  %v1806_v23 = vmul.f32 50.0, %v1790_v22  ;;  %v663_v24 = vadd.f32 %v3583_v26, %v583_v48 }
 0x2cd   :  { %2122 = vmatmul.mubr.bf16.vlgmr.msra.gmra.mrb[4].mxu0 %v1894_v58  ;;  %v634_v58 = vadd.f32 %v618_v37, %v602_v2  ;;  %v1791_v12 = vadd.f32 %v1775_v29, %v1759_v62  ;;  %v649_v38 = vmul.f32 50.0, %v633_v4  ;;  %v1168_v9 = vsub.f32 -2.3025851, %v1138_v19  ;;  %v2366_v2 = vpop.eup %2365 }
 0x2ce   :  { %v1170_v37 = vsub.f32 -2.3025851, %v1142_v33  ;;  %v2368_v41 = vpop.eup %2367  ;;  %v1994_v34 = vadd.f32 -0.5, %v663_v24  ;;  %v1709_v4 = vmul.f32 0.6931472, %v2364_v31 }
 0x2cf   :  { %v650_v61 = vmul.f32 50.0, %v634_v58  ;;  %v1248_v15 = vadd.f32 %v1232_v46, %v1168_v9  ;;  %v1807_v27 = vmul.f32 50.0, %v1791_v12  ;;  %v665_v53 = vadd.f32 %v649_v38, %v585_v5  ;;  %v2370_v62 = vpop.eup %2369 }
 0x2d0   :  { %v1250_v32 = vadd.f32 %v1234_v49, %v1170_v37  ;;  %v1995_v46 = vadd.f32 -0.5, %v664_v52  ;;  %v695_v1 = vsel %vm530_vm2, %v1994_v34, 0.0  ;;  %v1711_v42 = vmul.f32 0.6931472, %v2366_v2 }
 0x2d1   :  { %v2007_v39 = vadd.f32 -0.5, %v1248_v15  ;;  %v666_v26 = vadd.f32 %v650_v61, %v586_v20  ;;  %v1996_v50 = vadd.f32 -0.5, %v665_v53  ;;  %v710_v45 = vadd.f32 %v3629_v17, %v695_v1 }
 0x2d2   :  { %v2009_v63 = vadd.f32 -0.5, %v1250_v32  ;;  %v696_v6 = vsel %vm530_vm2, %v1995_v46, 0.0  ;;  %v1713_v35 = vmul.f32 0.6931472, %v2368_v41  ;;  %v1715_v19 = vmul.f32 0.6931472, %v2370_v62 }
 0x2d3   :  { %v1280_v57 = vsel %vm530_vm2, %v2007_v39, 0.0  ;;  %v1997_v30 = vadd.f32 -0.5, %v666_v26  ;;  %v697_v0 = vsel %vm530_vm2, %v1996_v50, 0.0  ;;  %v1740_v49 = vsub.f32 -2.3025851, %v1709_v4 }
 0x2d4   :  { %v1295_v13 = vadd.f32 %v1280_v57, %v1279_v8  ;;  %v1282_v29 = vsel %vm530_vm2, %v2009_v63, 0.0  ;;  %v711_v36 = vadd.f32 %v710_v45, %v696_v6  ;;  %v1741_v54 = vsub.f32 -2.3025851, %v1711_v42 }
 0x2d5   :  { %v698_v12 = vsel %vm530_vm2, %v1997_v30, 0.0  ;;  %v1742_v16 = vsub.f32 -2.3025851, %v1713_v35  ;;  %v1743_v38 = vsub.f32 -2.3025851, %v1715_v19  ;;  %v1820_v61 = vadd.f32 %v1804_v43, %v1740_v49 }
 0x2d6   :  { %v1296_v58 = vadd.f32 %v1295_v13, %v1281_v21  ;;  %v712_v10 = vadd.f32 %v711_v36, %v697_v0  ;;  %v1821_v33 = vadd.f32 %v1805_v56, %v1741_v54 }
 0x2d7   :  { %v1822_v9 = vadd.f32 %v1806_v23, %v1742_v16  ;;  %v1823_v17 = vadd.f32 %v1807_v27, %v1743_v38  ;;  %v2022_v51 = vadd.f32 -0.5, %v1820_v61 }
 0x2d8   :  { %v1297_v22 = vadd.f32 %v1296_v58, %v1282_v29  ;;  %v713_v44 = vadd.f32 %v712_v10, %v698_v12  ;;  %v2023_v55 = vadd.f32 -0.5, %v1821_v33 }
 0x2d9   :  { %v2024_v59 = vadd.f32 -0.5, %v1822_v9  ;;  %v2025_v3 = vadd.f32 -0.5, %v1823_v17  ;;  %v1852_v37 = vsel %vm1691_vm3, %v2022_v51, 0.0 }
 0x2da   :  { %1310 = vadd.xlane.f32.xlu1 %v1297_v22  ;;  %v1853_v15 = vsel %vm1691_vm3, %v2023_v55, 0.0 }
 0x2db   :  { %v1854_v7 = vsel %vm1691_vm3, %v2024_v59, 0.0  ;;  %v1868_v28 = vadd.f32 %v1853_v15, %v1852_v37  ;;  %v1855_v11 = vsel %vm1691_vm3, %v2025_v3, 0.0 }
 0x2dd   :  { %v1869_v25 = vadd.f32 %v1868_v28, %v1854_v7 }
 0x2df   :  { %v1870_v40 = vadd.f32 %v1869_v25, %v1855_v11 }
 0x2e1   :  { %1883 = vadd.xlane.f32.xlu1 %v1870_v40 }
 0x367   :  { %v1311_v14 = vpop.xlane.xlu1 %1310 }
 0x368   :  { %v1312_v39 = vrot.slane %v1311_v14, 4 }
 0x36a   :  { %v1313_v18 = vadd.f32 %v1312_v39, %v1311_v14 }
 0x36c   :  { %v1314_v5 = vrot.slane %v1313_v18, 2 }
 0x36e   :  { %v1884_v32 = vpop.xlane.xlu1 %1883  ;;  %v1315_v20 = vadd.f32 %v1314_v5, %v1313_v18 }
 0x36f   :  { %v1885_v47 = vrot.slane %v1884_v32, 4 }
 0x370   :  { %v1316_v13 = vrot.slane %v1315_v20, 1 }
 0x371   :  { %v1886_v31 = vadd.f32 %v1885_v47, %v1884_v32 }
 0x372   :  { %v1317_v29 = vadd.f32 %v1316_v13, %v1315_v20 }
 0x373   :  { %v1887_v2 = vrot.slane %v1886_v31, 2 }
 0x375   :  { %v1888_v41 = vadd.f32 %v1887_v2, %v1886_v31 }
 0x377   :  { %v1889_v34 = vrot.slane %v1888_v41, 1 }
 0x379   :  { %v1890_v4 = vadd.f32 %v1889_v34, %v1888_v41 }
 0x3a0   :  { %v1937_v43 = vpop.f32.mrb[4].mxu0 }
 0x3a1   :  { %v2123_v48 = vpop.f32.mrb[5].mxu0  ;;  %v1943_v56 = vsel %vm1691_vm3, %v1937_v43, -1e+30 }
 0x3a2   :  { %1944 = vmax.xlane.f32.xlu0 %v1943_v56  ;;  %v1940_v23 = vpop.f32.mrb[6].mxu0 }
 0x3a3   :  { %v2124_v27 = vpop.f32.mrb[7].mxu0 }
 0x3a6   :  { %722 = vadd.xlane.f32.xlu0 %v713_v44 }
 0x42f   :  { %v1945_v60 = vpop.xlane.xlu0 %1944 }
 0x430   :  { %v1946_v8 = vsub.f32 %v1943_v56, %v1945_v60 }
 0x432   :  { %v1947_v24 = vmul.f32 1.442695, %v1946_v8 }
 0x433   :  { %v723_v63 = vpop.xlane.xlu0 %722 }
 0x434   :  { %2371 = vpow2.f32 %v1947_v24  ;;  %v724_v57 = vrot.slane %v723_v63, 4 }
 0x436   :  { %v725_v52 = vadd.f32 %v724_v57, %v723_v63 }
 0x438   :  { %v726_v21 = vrot.slane %v725_v52, 2 }
 0x43a   :  { %v727_v53 = vadd.f32 %v726_v21, %v725_v52 }
 0x43c   :  { %v728_v62 = vrot.slane %v727_v53, 1 }
 0x43e   :  { %v2372_v26 = vpop.eup %2371  ;;  %v729_v46 = vadd.f32 %v728_v62, %v727_v53 }
 0x43f   :  { %1949 = vadd.xlane.f32.xlu0 %v2372_v26 }
 0x440   :  { %2125 = vpush %v729_v46 }
 0x441   :  { %2127 = vpush %v1317_v29 }
 0x442   :  { %2129 = vpush %v1890_v4 }
 0x471   :  { %s2126_s9 = spop %2125 }
 0x472   :  { %v731_v58 = vstv %s2126_s9  ;;  %s2128_s27 = spop %2127 }
 0x473   :  { %v1319_v50 = vstv %s2128_s27  ;;  %s2130_s28 = spop %2129 }
 0x474   :  { %v1320_v1 = vadd.f32 %v1319_v50, %v731_v58  ;;  %v1892_v42 = vstv %s2130_s28 }
 0x476   :  { %v1893_v30 = vadd.f32 %v1892_v42, %v1320_v1 }
 0x478   :  { %1955 = vst.msk [vmem:[#allocation20] sm:$0x1] %vm1954_vm4, %v1893_v30 }
 0x479   :  { %2614 = shalt.err (!%p2611_p0)
}
 0x47a   :  { %s2615_s3 = scalar_lea.hbm %s3689_s11, 16 }
 0x47b   :  { %p2616_p1 = scmp.ne.s32.totalorder %s3689_s11, %s2615_s3  ;;  %p2619_p2 = scmp.lt.u32.totalorder %s2615_s3, %s3689_s11 }
 0x47d   :  { %p2621_p3 = pnand %p2619_p2, %p2616_p1 }
 0x47f   :  { %2624 = shalt.err (!%p2621_p3)
}
 0x480   :  { %1975 = dma.vmem_to_hbm [thread:$0]  %s1973_s4, 16, %s3689_s11, [#allocation21]  }
 0x481   :  { %s2678_s2 = smov [#allocation19]  }
 0x482   :  { %s1962_s23 = sshll.u32 %s2678_s2, 4  ;;  %s1963_s23 = int_to_ptr.vmem [resolvable:$true] %s1962_s23 }
 0x483   :  { %s2625_s1 = scalar_lea.vmem %s1963_s23, 128  ;;  %p2630_p5 = scmp.lt.s32.totalorder %s1963_s23, %s1963_s23 }
 0x484   :  { %p2626_p4 = scmp.ne.s32.totalorder %s1963_s23, %s2625_s1  ;;  %p2631_p6 = scmp.lt.s32.totalorder %s2625_s1, %s2625_s1 }
 0x486   :  { %p2632_p7 = por %p2631_p6, %p2630_p5 }
 0x488   :  { %p2633_p8 = pnand %p2632_p7, %p2626_p4 }
 0x4cc   :  { %v1950_v6 = vpop.xlane.xlu0 %1949 }
 0x4cd   :  { %2373 = vrcp.f32 %v1950_v6 }
 0x4d7   :  { %v2374_v45 = vpop.eup %2373 }
 0x4d8   :  { %v1952_v35 = vmul.f32 %v2374_v45, %v2372_v26 }
 0x4da   :  { %1953 = vst [vmem:[#allocation19] sm:$0xff] %v1952_v35 }
 0x4db   :  { %2636 = shalt.err (!%p2633_p8)
}
 0x4dc   :  { %s2637_s29 = scalar_lea.hbm %s3688_s10, 128 }
 0x4dd   :  { %p2638_p9 = scmp.ne.s32.totalorder %s3688_s10, %s2637_s29  ;;  %p2641_p10 = scmp.lt.u32.totalorder %s2637_s29, %s3688_s10 }
 0x4df   :  { %p2643_p11 = pnand %p2641_p10, %p2638_p9 }
 0x4e1   :  { %2646 = shalt.err (!%p2643_p11)
}
 0x4e2   :  { %1965 = dma.vmem_to_hbm [thread:$0]  %s1963_s23, 128, %s3688_s10, [#allocation4]  }
 0x4e3   :  { %2659 = dma.done.wait [#allocation4], 128  }
 0x4e4   :  { %2660 = vsyncadd [#allocation4], 4294967168 }
 0x4e5   :  { %2661 = dma.done.wait [#allocation21], 16  }
 0x4e6   :  { %2662 = vsyncadd [#allocation21], 4294967280 }
 0x4e7   :  { %1982 = vsyncpa [#allocation3], 1 }
 0x4e8   :  { %1983 = vsyncpa [#allocation6], 1 }
 0x4e9   :  { %1984 = vsyncpa [#allocation9], 1 }
 0x4ea   :  { %1985 = vsyncpa [#allocation12], 1 }
 0x4eb   :  { %1986 = vsyncpa [#allocation15], 1 }
 0x4ec   :  { %1987 = vsyncpa [#allocation18], 1 }
 0x4ed   :  { %1988 = vsyncpa [#allocation4], 1 }
 0x4ee   :  { %1989 = vsyncpa [#allocation21], 1 }

</bundles_post_ra>
